<compile_context>
chip_gen: v5e
topology: v5e:2x2
jax: 0.10.0
libtpu: 0.0.40
codegen_flags: <defaults>
</compile_context>

<pallas_src>
import functools

import jax
import jax.numpy as jnp
from jax.experimental import pallas as pl
from jax.experimental.pallas import tpu as pltpu


def _round_up(x, m):
    return (x + m - 1) // m * m


def _pick_tile_rows(h, w, target_lanes=512):
    """Row-tile TH: divides H, TH*W lane-aligned (mult of 128), ~target lanes."""
    cand = [th for th in range(1, h + 1)
            if h % th == 0 and ((th * w) % 128 == 0 or th == h)]
    if not cand:
        return h
    small = [th for th in cand if th * w <= target_lanes]
    return max(small) if small else min(cand)


# -----------------------------------------------------------------------------
# Kernel: one (batch, row-tile) pair per grid step.
#   grid_ref  : (1, D*C_PAD, Hg*Wg)  bilateral grid (depth-major, chan-minor)
#   guide_ref : (1, 1, TH*W)         guidemap values for this row tile
#   mask_ref  : (Hg*Wg, TH*Wg)       delta(v_row == v_col)  (tile-invariant)
#   rowg_ref  : (Hg*Wg, 1)           grid-row index g per W_y row
#   colt_ref  : (1, TH*Wg)           within-tile output-row index t per W_y col
#   wxk_ref   : (TH*Wg, TH*W)        kron(I_TH, hat_x)      (tile-invariant)
#   out_ref   : (1, C_PAD, TH*W)
# -----------------------------------------------------------------------------
def _slice_kernel(grid_ref, guide_ref, mask_ref, rowg_ref, colt_ref, wxk_ref,
                  out_ref, *, depth, c_pad, hg_size, h, tile_rows):
    thw = out_ref.shape[2]
    h0 = (pl.program_id(1) * tile_rows).astype(jnp.float32)   # first row of tile

    # ---- W_y: separable row-resample weights, built in-kernel (hat form) ----
    # W_y[(g,v),(t,v')] = max(0, 1 - |gy(h0+t) - g|) * [v == v']
    sy = (hg_size - 1) / (h - 1)
    gy = (h0 + colt_ref[...]) * sy                                  # (1, TH*Wg)
    w_y = mask_ref[...] * jnp.maximum(0.0, 1.0 - jnp.abs(gy - rowg_ref[...]))

    # ---- spatial bilinear resample: two small MXU matmuls ----
    planes = grid_ref[0]                                            # (D*C_PAD, Hg*Wg)
    t1 = jnp.dot(planes, w_y, preferred_element_type=jnp.float32)   # (D*C_PAD, TH*Wg)
    up = jnp.dot(t1, wxk_ref[...],
                 preferred_element_type=jnp.float32)                # (D*C_PAD, TH*W)

    # ---- depth (guide) linear interpolation, zeros padding ----
    gz = (guide_ref[0] + 1.0) * (0.5 * (depth - 1))                 # (1, TH*W)
    acc = jnp.zeros((c_pad, thw), jnp.float32)
    for d in range(depth):                                          # depth is small (8)
        wz = jnp.maximum(0.0, 1.0 - jnp.abs(gz - jnp.float32(d)))   # hat weight
        acc = acc + up[d * c_pad:(d + 1) * c_pad, :] * wz
    out_ref[0] = acc                                                # padded, lane-dense


# -----------------------------------------------------------------------------
# Plain-JAX glue
# -----------------------------------------------------------------------------
def slice_forward(bilateral_grid, guidemap):
    """bilateral_grid (N, C, D, Hg, Wg), guidemap (N, 1, H, W) -> (N, C, H, W)."""
    n, c, depth, hg_size, wg_size = bilateral_grid.shape
    _, _, h, w = guidemap.shape
    hw = h * w
    c_pad = _round_up(c, 8)
    th = _pick_tile_rows(h, w)
    n_tiles = h // th
    hgwg = hg_size * wg_size
    thwg = th * wg_size
    thw = th * w

    # depth-major / channel-minor layout, channels padded to 8-sublane alignment
    # TODO(synk): fold this transpose/pad into the grid producer to avoid the
    # extra HBM copy (small: N*D*C_PAD*Hg*Wg*4 bytes).
    grid_in = jnp.transpose(bilateral_grid, (0, 2, 1, 3, 4))          # (N, D, C, Hg, Wg)
    grid_in = jnp.pad(grid_in, ((0, 0), (0, 0), (0, c_pad - c), (0, 0), (0, 0)))
    grid_in = grid_in.reshape(n, depth * c_pad, hgwg).astype(jnp.float32)
    guide_in = guidemap.reshape(n, 1, hw).astype(jnp.float32)

    # Tiny tile-invariant constants (no dense (Hg*Wg, H*W) gather matrix).
    r = jnp.arange(hgwg, dtype=jnp.int32)
    rowg = (r // wg_size).astype(jnp.float32).reshape(hgwg, 1)        # g per W_y row
    rowv = r % wg_size
    l1 = jnp.arange(thwg, dtype=jnp.int32)
    colt = (l1 // wg_size).astype(jnp.float32).reshape(1, thwg)       # t per W_y col
    colv = l1 % wg_size
    mask = (rowv[:, None] == colv[None, :]).astype(jnp.float32)       # (Hg*Wg, TH*Wg)

    # W_x = kron(I_TH, hat_x): rows (t, v), cols (t', w)
    l2 = jnp.arange(thw, dtype=jnp.int32)
    gx = (l2 % w).astype(jnp.float32) * ((wg_size - 1) / (w - 1))
    hat_x = jnp.maximum(0.0, 1.0 - jnp.abs(gx[None, :]
                                           - (l1 % wg_size).astype(jnp.float32)[:, None]))
    wxk = jnp.where((l1 // wg_size)[:, None] == (l2 // w)[None, :],
                    hat_x, 0.0).astype(jnp.float32)                   # (TH*Wg, TH*W)

    kernel = functools.partial(_slice_kernel, depth=depth, c_pad=c_pad,
                               hg_size=hg_size, h=h, tile_rows=th)
    out = pl.pallas_call(
        kernel,
        out_shape=jax.ShapeDtypeStruct((n, c_pad, hw), jnp.float32),
        grid=(n, n_tiles),
        in_specs=[
            pl.BlockSpec((1, depth * c_pad, hgwg), lambda b, t: (b, 0, 0)),
            pl.BlockSpec((1, 1, thw), lambda b, t: (b, 0, t)),
            pl.BlockSpec((hgwg, thwg), lambda b, t: (0, 0)),
            pl.BlockSpec((hgwg, 1), lambda b, t: (0, 0)),
            pl.BlockSpec((1, thwg), lambda b, t: (0, 0)),
            pl.BlockSpec((thwg, thw), lambda b, t: (0, 0)),
        ],
        out_specs=pl.BlockSpec((1, c_pad, thw), lambda b, t: (b, 0, t)),
        compiler_params=pltpu.CompilerParams(
            dimension_semantics=("parallel", "parallel"),
        ),
    )(grid_in, guide_in, mask, rowg, colt, wxk)
    return out[:, :c, :].reshape(n, c, h, w)


# -----------------------------------------------------------------------------
# Pure-JAX reference: trilinear grid_sample, align_corners=True, zeros padding.
# -----------------------------------------------------------------------------
def _slice_reference(bilateral_grid, guidemap):
    n, c, depth, hg_size, wg_size = bilateral_grid.shape
    _, _, h, w = guidemap.shape
    gy = jnp.arange(h, dtype=jnp.float32) * (hg_size - 1) / (h - 1)       # (H,)
    gx = jnp.arange(w, dtype=jnp.float32) * (wg_size - 1) / (w - 1)       # (W,)
    gz = (guidemap[:, 0] + 1.0) * (0.5 * (depth - 1))                     # (N, H, W)
    gyb = jnp.broadcast_to(gy[None, :, None], (n, h, w))
    gxb = jnp.broadcast_to(gx[None, None, :], (n, h, w))

    z0 = jnp.floor(gz)
    fz = gz - z0
    y0 = jnp.floor(gyb)
    fy = gyb - y0
    x0 = jnp.floor(gxb)
    fx = gxb - x0
    flat = bilateral_grid.reshape(n, c, depth * hg_size * wg_size)

    out = jnp.zeros((n, c, h, w), jnp.float32)
    for dz in (0, 1):
        for dy in (0, 1):
            for dx in (0, 1):
                zc = z0 + dz
                yc = y0 + dy
                xc = x0 + dx
                wz = fz if dz else 1.0 - fz
                wy = fy if dy else 1.0 - fy
                wx = fx if dx else 1.0 - fx
                valid = ((zc >= 0) & (zc <= depth - 1)
                         & (yc >= 0) & (yc <= hg_size - 1)
                         & (xc >= 0) & (xc <= wg_size - 1)).astype(jnp.float32)
                zi = jnp.clip(zc, 0, depth - 1).astype(jnp.int32)
                yi = jnp.clip(yc, 0, hg_size - 1).astype(jnp.int32)
                xi = jnp.clip(xc, 0, wg_size - 1).astype(jnp.int32)
                idx = (zi * hg_size + yi) * wg_size + xi                  # (N, H, W)
                gathered = jnp.take_along_axis(
                    flat, idx.reshape(n, 1, h * w), axis=2).reshape(n, c, h, w)
                out = out + gathered * (wz * wy * wx * valid)[:, None]
    return out


# -----------------------------------------------------------------------------
if __name__ == "__main__":
    key = jax.random.PRNGKey(0)
    kg, km = jax.random.split(key)

    N, C, D, HG, WG = 2, 12, 8, 16, 16     # bilateral grid (batch, coeffs, luma bins, Hg, Wg)
    H, W = 64, 64                          # guidemap / output resolution

    bilateral_grid = jax.random.normal(kg, (N, C, D, HG, WG), dtype=jnp.float32)
    # guide values roughly in [-1.1, 1.1]: exercises both in-range interpolation
    # and the zeros-padding path of grid_sample.
    guidemap = jax.random.uniform(km, (N, 1, H, W), dtype=jnp.float32,
                                  minval=-1.1, maxval=1.1)

    out = slice_forward(bilateral_grid, guidemap)
    out = jax.block_until_ready(out)

    ref = _slice_reference(bilateral_grid, guidemap)
    assert out.shape == (N, C, H, W)
    err = float(jnp.max(jnp.abs(out - ref)))
    assert err < 1e-4, f"max abs err {err}"

    print("KERNEL_OK")
</pallas_src>

<mosaic_0001>
module attributes {stable_mosaic.version = 11 : i64} {
  func.func @_slice_kernel(%arg0: i32, %arg1: i32, %arg2: memref<1x128x256xf32, #tpu.memory_space<vmem>>, %arg3: memref<1x1x512xf32, #tpu.memory_space<vmem>>, %arg4: memref<256x128xf32, #tpu.memory_space<vmem>>, %arg5: memref<256x1xf32, #tpu.memory_space<vmem>>, %arg6: memref<1x128xf32, #tpu.memory_space<vmem>>, %arg7: memref<128x512xf32, #tpu.memory_space<vmem>>, %arg8: memref<1x16x512xf32, #tpu.memory_space<vmem>>) attributes {dimension_semantics = [#tpu.dimension_semantics<parallel>, #tpu.dimension_semantics<parallel>], iteration_bounds = array<i64: 2, 8>, scalar_prefetch = 0 : i64, scratch_operands = 0 : i64, tpu.core_type = #tpu.core_type<tc>, window_params = [{transform_indices = @transform_0, window_bounds = array<i64: 1, 128, 256>}, {transform_indices = @transform_1, window_bounds = array<i64: 1, 1, 512>}, {pipeline_mode = #tpu.pipeline_mode<synchronous>, transform_indices = @transform_2, window_bounds = array<i64: 256, 128>}, {pipeline_mode = #tpu.pipeline_mode<synchronous>, transform_indices = @transform_3, window_bounds = array<i64: 256, 1>}, {pipeline_mode = #tpu.pipeline_mode<synchronous>, transform_indices = @transform_4, window_bounds = array<i64: 1, 128>}, {pipeline_mode = #tpu.pipeline_mode<synchronous>, transform_indices = @transform_5, window_bounds = array<i64: 128, 512>}, {transform_indices = @transform_6, window_bounds = array<i64: 1, 16, 512>}]} {
    %c8_i32 = arith.constant 8 : i32
    %0 = arith.muli %arg1, %c8_i32 : i32
    %1 = arith.sitofp %0 : i32 to f32
    %c0 = arith.constant 0 : index
    %c0_0 = arith.constant 0 : index
    %2 = vector.load %arg6[%c0, %c0_0] : memref<1x128xf32, #tpu.memory_space<vmem>>, vector<1x128xf32>
    %3 = vector.broadcast %1 : f32 to vector<1x128xf32>
    %4 = arith.addf %3, %2 : vector<1x128xf32>
    %cst = arith.constant 0.238095239 : f32
    %5 = vector.broadcast %cst : f32 to vector<1x128xf32>
    %6 = arith.mulf %4, %5 : vector<1x128xf32>
    %c0_1 = arith.constant 0 : index
    %c0_2 = arith.constant 0 : index
    %7 = vector.load %arg4[%c0_1, %c0_2] : memref<256x128xf32, #tpu.memory_space<vmem>>, vector<256x128xf32>
    %c0_3 = arith.constant 0 : index
    %c0_4 = arith.constant 0 : index
    %8 = vector.load %arg5[%c0_3, %c0_4] : memref<256x1xf32, #tpu.memory_space<vmem>>, vector<256x1xf32>
    %9 = vector.broadcast %6 : vector<1x128xf32> to vector<256x128xf32>
    %10 = vector.broadcast %8 : vector<256x1xf32> to vector<256x128xf32>
    %11 = arith.subf %9, %10 : vector<256x128xf32>
    %12 = math.absf %11 : vector<256x128xf32>
    %cst_5 = arith.constant 1.000000e+00 : f32
    %13 = vector.broadcast %cst_5 : f32 to vector<256x128xf32>
    %14 = arith.subf %13, %12 : vector<256x128xf32>
    %cst_6 = arith.constant 0.000000e+00 : f32
    %15 = vector.broadcast %cst_6 : f32 to vector<256x128xf32>
    %16 = arith.maximumf %15, %14 : vector<256x128xf32>
    %17 = arith.mulf %7, %16 : vector<256x128xf32>
    %c0_7 = arith.constant 0 : index
    %c0_8 = arith.constant 0 : index
    %c0_9 = arith.constant 0 : index
    %18 = vector.load %arg2[%c0_7, %c0_8, %c0_9] : memref<1x128x256xf32, #tpu.memory_space<vmem>>, vector<1x128x256xf32>
    %19 = vector.shape_cast %18 : vector<1x128x256xf32> to vector<128x256xf32>
    %cst_10 = arith.constant dense<0.000000e+00> : vector<128x128xf32>
    %20 = tpu.matmul %19, %17, %cst_10 {dimension_numbers = #tpu.dot_dimension_numbers<[1], [0], [0], [1], [0, 0, 1, 1], [], []>} : vector<128x256xf32>, vector<256x128xf32>, vector<128x128xf32> -> vector<128x128xf32>
    %c0_11 = arith.constant 0 : index
    %c0_12 = arith.constant 0 : index
    %21 = vector.load %arg7[%c0_11, %c0_12] : memref<128x512xf32, #tpu.memory_space<vmem>>, vector<128x512xf32>
    %cst_13 = arith.constant dense<0.000000e+00> : vector<128x512xf32>
    %22 = tpu.matmul %20, %21, %cst_13 {dimension_numbers = #tpu.dot_dimension_numbers<[1], [0], [0], [1], [0, 0, 1, 1], [], []>} : vector<128x128xf32>, vector<128x512xf32>, vector<128x512xf32> -> vector<128x512xf32>
    %c0_14 = arith.constant 0 : index
    %c0_15 = arith.constant 0 : index
    %c0_16 = arith.constant 0 : index
    %23 = vector.load %arg3[%c0_14, %c0_15, %c0_16] : memref<1x1x512xf32, #tpu.memory_space<vmem>>, vector<1x1x512xf32>
    %24 = vector.shape_cast %23 : vector<1x1x512xf32> to vector<1x512xf32>
    %cst_17 = arith.constant 1.000000e+00 : f32
    %25 = vector.broadcast %cst_17 : f32 to vector<1x512xf32>
    %26 = arith.addf %24, %25 : vector<1x512xf32>
    %cst_18 = arith.constant 3.500000e+00 : f32
    %27 = vector.broadcast %cst_18 : f32 to vector<1x512xf32>
    %28 = arith.mulf %26, %27 : vector<1x512xf32>
    %cst_19 = arith.constant 0.000000e+00 : f32
    %29 = vector.broadcast %cst_19 : f32 to vector<16x512xf32>
    %cst_20 = arith.constant 0.000000e+00 : f32
    %30 = vector.broadcast %cst_20 : f32 to vector<1x512xf32>
    %31 = arith.subf %28, %30 : vector<1x512xf32>
    %32 = math.absf %31 : vector<1x512xf32>
    %cst_21 = arith.constant 1.000000e+00 : f32
    %33 = vector.broadcast %cst_21 : f32 to vector<1x512xf32>
    %34 = arith.subf %33, %32 : vector<1x512xf32>
    %cst_22 = arith.constant 0.000000e+00 : f32
    %35 = vector.broadcast %cst_22 : f32 to vector<1x512xf32>
    %36 = arith.maximumf %35, %34 : vector<1x512xf32>
    %37 = vector.extract_strided_slice %22 {offsets = [0, 0], sizes = [16, 512], strides = [1, 1]} : vector<128x512xf32> to vector<16x512xf32>
    %38 = vector.broadcast %36 : vector<1x512xf32> to vector<16x512xf32>
    %39 = arith.mulf %37, %38 : vector<16x512xf32>
    %40 = arith.addf %29, %39 : vector<16x512xf32>
    %cst_23 = arith.constant 1.000000e+00 : f32
    %41 = vector.broadcast %cst_23 : f32 to vector<1x512xf32>
    %42 = arith.subf %28, %41 : vector<1x512xf32>
    %43 = math.absf %42 : vector<1x512xf32>
    %cst_24 = arith.constant 1.000000e+00 : f32
    %44 = vector.broadcast %cst_24 : f32 to vector<1x512xf32>
    %45 = arith.subf %44, %43 : vector<1x512xf32>
    %cst_25 = arith.constant 0.000000e+00 : f32
    %46 = vector.broadcast %cst_25 : f32 to vector<1x512xf32>
    %47 = arith.maximumf %46, %45 : vector<1x512xf32>
    %48 = vector.extract_strided_slice %22 {offsets = [16, 0], sizes = [16, 512], strides = [1, 1]} : vector<128x512xf32> to vector<16x512xf32>
    %49 = vector.broadcast %47 : vector<1x512xf32> to vector<16x512xf32>
    %50 = arith.mulf %48, %49 : vector<16x512xf32>
    %51 = arith.addf %40, %50 : vector<16x512xf32>
    %cst_26 = arith.constant 2.000000e+00 : f32
    %52 = vector.broadcast %cst_26 : f32 to vector<1x512xf32>
    %53 = arith.subf %28, %52 : vector<1x512xf32>
    %54 = math.absf %53 : vector<1x512xf32>
    %cst_27 = arith.constant 1.000000e+00 : f32
    %55 = vector.broadcast %cst_27 : f32 to vector<1x512xf32>
    %56 = arith.subf %55, %54 : vector<1x512xf32>
    %cst_28 = arith.constant 0.000000e+00 : f32
    %57 = vector.broadcast %cst_28 : f32 to vector<1x512xf32>
    %58 = arith.maximumf %57, %56 : vector<1x512xf32>
    %59 = vector.extract_strided_slice %22 {offsets = [32, 0], sizes = [16, 512], strides = [1, 1]} : vector<128x512xf32> to vector<16x512xf32>
    %60 = vector.broadcast %58 : vector<1x512xf32> to vector<16x512xf32>
    %61 = arith.mulf %59, %60 : vector<16x512xf32>
    %62 = arith.addf %51, %61 : vector<16x512xf32>
    %cst_29 = arith.constant 3.000000e+00 : f32
    %63 = vector.broadcast %cst_29 : f32 to vector<1x512xf32>
    %64 = arith.subf %28, %63 : vector<1x512xf32>
    %65 = math.absf %64 : vector<1x512xf32>
    %cst_30 = arith.constant 1.000000e+00 : f32
    %66 = vector.broadcast %cst_30 : f32 to vector<1x512xf32>
    %67 = arith.subf %66, %65 : vector<1x512xf32>
    %cst_31 = arith.constant 0.000000e+00 : f32
    %68 = vector.broadcast %cst_31 : f32 to vector<1x512xf32>
    %69 = arith.maximumf %68, %67 : vector<1x512xf32>
    %70 = vector.extract_strided_slice %22 {offsets = [48, 0], sizes = [16, 512], strides = [1, 1]} : vector<128x512xf32> to vector<16x512xf32>
    %71 = vector.broadcast %69 : vector<1x512xf32> to vector<16x512xf32>
    %72 = arith.mulf %70, %71 : vector<16x512xf32>
    %73 = arith.addf %62, %72 : vector<16x512xf32>
    %cst_32 = arith.constant 4.000000e+00 : f32
    %74 = vector.broadcast %cst_32 : f32 to vector<1x512xf32>
    %75 = arith.subf %28, %74 : vector<1x512xf32>
    %76 = math.absf %75 : vector<1x512xf32>
    %cst_33 = arith.constant 1.000000e+00 : f32
    %77 = vector.broadcast %cst_33 : f32 to vector<1x512xf32>
    %78 = arith.subf %77, %76 : vector<1x512xf32>
    %cst_34 = arith.constant 0.000000e+00 : f32
    %79 = vector.broadcast %cst_34 : f32 to vector<1x512xf32>
    %80 = arith.maximumf %79, %78 : vector<1x512xf32>
    %81 = vector.extract_strided_slice %22 {offsets = [64, 0], sizes = [16, 512], strides = [1, 1]} : vector<128x512xf32> to vector<16x512xf32>
    %82 = vector.broadcast %80 : vector<1x512xf32> to vector<16x512xf32>
    %83 = arith.mulf %81, %82 : vector<16x512xf32>
    %84 = arith.addf %73, %83 : vector<16x512xf32>
    %cst_35 = arith.constant 5.000000e+00 : f32
    %85 = vector.broadcast %cst_35 : f32 to vector<1x512xf32>
    %86 = arith.subf %28, %85 : vector<1x512xf32>
    %87 = math.absf %86 : vector<1x512xf32>
    %cst_36 = arith.constant 1.000000e+00 : f32
    %88 = vector.broadcast %cst_36 : f32 to vector<1x512xf32>
    %89 = arith.subf %88, %87 : vector<1x512xf32>
    %cst_37 = arith.constant 0.000000e+00 : f32
    %90 = vector.broadcast %cst_37 : f32 to vector<1x512xf32>
    %91 = arith.maximumf %90, %89 : vector<1x512xf32>
    %92 = vector.extract_strided_slice %22 {offsets = [80, 0], sizes = [16, 512], strides = [1, 1]} : vector<128x512xf32> to vector<16x512xf32>
    %93 = vector.broadcast %91 : vector<1x512xf32> to vector<16x512xf32>
    %94 = arith.mulf %92, %93 : vector<16x512xf32>
    %95 = arith.addf %84, %94 : vector<16x512xf32>
    %cst_38 = arith.constant 6.000000e+00 : f32
    %96 = vector.broadcast %cst_38 : f32 to vector<1x512xf32>
    %97 = arith.subf %28, %96 : vector<1x512xf32>
    %98 = math.absf %97 : vector<1x512xf32>
    %cst_39 = arith.constant 1.000000e+00 : f32
    %99 = vector.broadcast %cst_39 : f32 to vector<1x512xf32>
    %100 = arith.subf %99, %98 : vector<1x512xf32>
    %cst_40 = arith.constant 0.000000e+00 : f32
    %101 = vector.broadcast %cst_40 : f32 to vector<1x512xf32>
    %102 = arith.maximumf %101, %100 : vector<1x512xf32>
    %103 = vector.extract_strided_slice %22 {offsets = [96, 0], sizes = [16, 512], strides = [1, 1]} : vector<128x512xf32> to vector<16x512xf32>
    %104 = vector.broadcast %102 : vector<1x512xf32> to vector<16x512xf32>
    %105 = arith.mulf %103, %104 : vector<16x512xf32>
    %106 = arith.addf %95, %105 : vector<16x512xf32>
    %cst_41 = arith.constant 7.000000e+00 : f32
    %107 = vector.broadcast %cst_41 : f32 to vector<1x512xf32>
    %108 = arith.subf %28, %107 : vector<1x512xf32>
    %109 = math.absf %108 : vector<1x512xf32>
    %cst_42 = arith.constant 1.000000e+00 : f32
    %110 = vector.broadcast %cst_42 : f32 to vector<1x512xf32>
    %111 = arith.subf %110, %109 : vector<1x512xf32>
    %cst_43 = arith.constant 0.000000e+00 : f32
    %112 = vector.broadcast %cst_43 : f32 to vector<1x512xf32>
    %113 = arith.maximumf %112, %111 : vector<1x512xf32>
    %114 = vector.extract_strided_slice %22 {offsets = [112, 0], sizes = [16, 512], strides = [1, 1]} : vector<128x512xf32> to vector<16x512xf32>
    %115 = vector.broadcast %113 : vector<1x512xf32> to vector<16x512xf32>
    %116 = arith.mulf %114, %115 : vector<16x512xf32>
    %117 = arith.addf %106, %116 : vector<16x512xf32>
    %c0_44 = arith.constant 0 : index
    %c0_45 = arith.constant 0 : index
    %c0_46 = arith.constant 0 : index
    %118 = vector.load %arg8[%c0_44, %c0_45, %c0_46] : memref<1x16x512xf32, #tpu.memory_space<vmem>>, vector<1x16x512xf32>
    %119 = vector.shape_cast %118 : vector<1x16x512xf32> to vector<16x512xf32>
    %120 = vector.shape_cast %117 : vector<16x512xf32> to vector<1x16x512xf32>
    tpu.vector_store %arg8[%c0_44, %c0_45, %c0_46], %120 {strides = array<i32>} : memref<1x16x512xf32, #tpu.memory_space<vmem>>, vector<1x16x512xf32>,
    return
  }
  func.func @transform_0(%arg0: i32, %arg1: i32) -> (i32, i32, i32) {
    %c0_i32 = arith.constant 0 : i32
    %c0_i32_0 = arith.constant 0 : i32
    %c0_i32_1 = arith.constant 0 : i32
    return %arg0, %c0_i32, %c0_i32_0 : i32, i32, i32
  }
  func.func @transform_1(%arg0: i32, %arg1: i32) -> (i32, i32, i32) {
    %c0_i32 = arith.constant 0 : i32
    %c0_i32_0 = arith.constant 0 : i32
    return %arg0, %c0_i32, %arg1 : i32, i32, i32
  }
  func.func @transform_2(%arg0: i32, %arg1: i32) -> (i32, i32) {
    %c0_i32 = arith.constant 0 : i32
    %c0_i32_0 = arith.constant 0 : i32
    %c0_i32_1 = arith.constant 0 : i32
    return %c0_i32, %c0_i32_0 : i32, i32
  }
  func.func @transform_3(%arg0: i32, %arg1: i32) -> (i32, i32) {
    %c0_i32 = arith.constant 0 : i32
    %c0_i32_0 = arith.constant 0 : i32
    %c0_i32_1 = arith.constant 0 : i32
    return %c0_i32, %c0_i32_0 : i32, i32
  }
  func.func @transform_4(%arg0: i32, %arg1: i32) -> (i32, i32) {
    %c0_i32 = arith.constant 0 : i32
    %c0_i32_0 = arith.constant 0 : i32
    %c0_i32_1 = arith.constant 0 : i32
    return %c0_i32, %c0_i32_0 : i32, i32
  }
  func.func @transform_5(%arg0: i32, %arg1: i32) -> (i32, i32) {
    %c0_i32 = arith.constant 0 : i32
    %c0_i32_0 = arith.constant 0 : i32
    %c0_i32_1 = arith.constant 0 : i32
    return %c0_i32, %c0_i32_0 : i32, i32
  }
  func.func @transform_6(%arg0: i32, %arg1: i32) -> (i32, i32, i32) {
    %c0_i32 = arith.constant 0 : i32
    %c0_i32_0 = arith.constant 0 : i32
    return %arg0, %c0_i32, %arg1 : i32, i32, i32
  }
}

</mosaic_0001>

<bundles_post_ra>
// kernel: tpu_custom_call.1
= control target key start
LH: loop header
LB: loop body
LE: loop exit
PB: predicated region body
PF: predicated region fallthrough
CT: control target
= control target key end

     0   :  { %s2699_s0 = inlined_call_operand.hbm [shape: f32[2,128,256], index: 0, kind: input, shape index: {}]   ;;  %s2700_s1 = inlined_call_operand.hbm [shape: f32[2,1,4096], index: 1, kind: input, shape index: {}]   ;;  %s2701_s2 = inlined_call_operand.vmem [shape: f32[256,128], index: 2, kind: input, shape index: {}]   ;;  %s2702_s3 = inlined_call_operand.vmem [shape: f32[256,1], index: 3, kind: input, shape index: {}]   ;;  %s2703_s4 = inlined_call_operand.vmem [shape: f32[1,128], index: 4, kind: input, shape index: {}]   ;;  %s2704_s5 = inlined_call_operand.hbm [shape: f32[128,512], index: 5, kind: input, shape index: {}]   ;;  %s2705_s6 = inlined_call_operand.hbm [shape: f32[2,16,4096], index: 6, kind: output, shape index: {}]  }
   0x1   :  { %2716 = sst [smem:[#allocation20_spill]] %s2699_s0 }
   0x2   :  { %2717 = sst [smem:[#allocation21_spill]] %s2701_s2 }
   0x3   :  { %2718 = sst [smem:[#allocation22_spill]] %s2702_s3 }
   0x4   :  { %2719 = sst [smem:[#allocation23_spill]] %s2703_s4 }
   0x5   :  { %2720 = sst [smem:[#allocation24_spill]] %s2704_s5 }
   0x6   :  { %2721 = sst [smem:[#allocation25_spill]] %s2705_s6 }
   0x7   :  { %11 = vsyncpa [#allocation3], 0 }
   0x8   :  { %13 = vsyncpa [#allocation3 + $0x1], 0 }
   0x9   :  { %14 = vsyncpa [#allocation6], 0 }
   0xa   :  { %16 = vsyncpa [#allocation6 + $0x1], 0 }
   0xb   :  { %17 = vsyncpa [#allocation4], 0 }
   0xc   :  { %19 = vsyncpa [#allocation4 + $0x1], 0  ;;  %s2065_s21 = smov 0   ;;  %s2067_s22 = smov 0  }
   0xd   :  { %s2069_s23 = smov 0   ;;  %s2071_s24 = smov 0  }
   0xe   :  { %s2073_s25 = smov 0   ;;  %s2075_s26 = smov 0  }
   0xf   :  { %s2077_s27 = smov 0   ;;  %s2079_s28 = smov 0  }
  0x10   :  { %s2081_s29 = smov 0   ;;  %s2083_s30 = smov 0  }
  0x11   :  { %s2085_s7 = smov 0  }
  0x12 LB: > { %2722 = sst [smem:[#allocation13_spill]] %s1979_s21  ;;  %s2121_s8 = sadd.s32 4294967295, %s2019_s7   ;;  %s2019_s7 = sphi %s2085_s7, %s25_s7   ;;  %s2015_s30 = sphi %s2083_s30, %s2758_s30   ;;  %s2011_s29 = sphi %s2081_s29, %s2757_s29   ;;  %s2007_s28 = sphi %s2079_s28, %s2756_s28   ;;  %s2003_s27 = sphi %s2077_s27, %s2755_s27   ;;  %s1999_s26 = sphi %s2075_s26, %s2754_s26   ;;  %s1995_s25 = sphi %s2073_s25, %s2753_s25   ;;  %s1991_s24 = sphi %s2071_s24, %s2752_s24   ;;  %s1987_s23 = sphi %s2069_s23, %s2751_s23   ;;  %s1983_s22 = sphi %s2067_s22, %s2750_s22   ;;  %s1979_s21 = sphi %s2065_s21, %s2749_s21  }
  0x13   : > { %2723 = sst [smem:[#allocation14_spill]] %s2003_s27  ;;  %p1609_p0 = scmp.ge.s32.totalorder %s2019_s7, 1 }
  0x14   : > { %2724 = sst [smem:[#allocation15_spill]] %s2007_s28  ;;  %p58_p1 = scmp.eq.s32.totalorder %s2121_s8, 0 }
  0x15   : > { %p208_p2 = scmp.lt.s32.totalorder %s2019_s7, 17  ;;  %s2725_s5 = sld [smem:[#allocation24_spill]] }
  0x16   : > { %s2021_s13 = smov [#allocation7]   ;;  %s2022_s15 = smov 512  }
  0x17   : > { %p2129_p3 = pnand %p1609_p0, %p208_p2  ;;  %s230_s14 = sshll.u32 %s2021_s13, 4  ;;  %s231_s14 = int_to_ptr.vmem [resolvable:$true] %s230_s14 }
  0x18   : > { %s2023_s16 = smov 32   ;;  %p51_p6 = scmp.ne.s32.totalorder %s1999_s26, %s1995_s25 }
  0x19   : > { %p1680_p4 = pneg %p2129_p3  ;;  %p52_p7 = scmp.eq.s32.totalorder %s2019_s7, 0 }
  0x1a   : > { %p57_p8 = scmp.ne.s32.totalorder %s1995_s25, %s1991_s24  ;;  %p1696_p9 = scmp.lt.s32.totalorder %s2019_s7, 16 }
  0x1b   : > { %s228_s11 = sshll.u32 %s2725_s5, 4  ;;  %p1681_p5 = pnand %p1680_p4, %p58_p1  ;;  %s229_s11 = int_to_ptr.hbm [resolvable:$true] %s228_s11 }
  0x1c   : > { %p53_p10 = por %p52_p7, %p51_p6  ;;  %s244_s18 = sand.u32 1, %s1999_s26  }
  0x1d   : > { %1683 = dma.hbm_to_vmem [thread:$0]  (!%p1681_p5), %s229_s11, 8192, %s231_s14, [#allocation6], %s2022_s15, %s2022_s15, %s2023_s16  }
  0x1e   : > { %p2149_p11 = por %p58_p1, %p57_p8  ;;  %s1612_s20 = sshll.u32 %s244_s18, 8 }
  0x1f   : > { %s1637_s9 = sshll.u32 %s2015_s30, 8  ;;  %s2728_s0 = sld [smem:[#allocation20_spill]] }
  0x20   : > { %s248_s14 = scalar_lea.vmem [#allocation2], %s1612_s20  ;;  %p1685_p12 = pnand %p1696_p9, %p53_p10 }
  0x21   : > { %s256_s15 = sshll.u32 %s248_s14, 4  ;;  %s245_s16 = scalar_lea.sflag [#allocation3], %s244_s18  ;;  %s257_s15 = int_to_ptr.vmem [resolvable:$true] %s256_s15 }
  0x22   : > { %s2024_s17 = smov 256   ;;  %s2025_s10 = smov 16  }
  0x23   : > { %s34_s11 = sadd.s32 1, %s2011_s29  ;;  %s37_s20 = sadd.s32 1, %s2015_s30 }
  0x24   : > { %p35_p13 = scmp.ge.s32.totalorder %s34_s11, 8  ;;  %p79_p0 = scmp.ne.s32.totalorder %s1987_s23, %s1983_s22 }
  0x25   : > { %s253_s13 = scalar_lea.hbm %s2728_s0, %s1637_s9  ;;  %s1608_s9 = sadd.s32 4294967294, %s2019_s7  }
  0x26   : > { %s254_s24 = sshll.u32 %s253_s13, 4  ;;  %s72_s13 = sadd.s32 1, %s1987_s23  ;;  %s255_s24 = int_to_ptr.hbm [resolvable:$true] %s254_s24 }
  0x27   : > { %1687 = dma.hbm_to_vmem [thread:$0]  (!%p1685_p12), %s255_s24, 4096, %s257_s15, %s245_s16, %s2024_s17, %s2024_s17, %s2025_s10  }
  0x28   : > { %s2760_s11 = smov (%p35_p13, %s34_s11), 0  ;;  %s2762_s20 = smov (!%p35_p13, %s37_s20), %s2015_s30 }
  0x29   : > { %2729 = sst [smem:[#allocation16_spill]] %s2760_s11  ;;  %s68_s18 = ssub.s32 %s2011_s29, %s2760_s11 }
  0x2a   : > { %p2172_p2 = por %p79_p0, %p52_p7  ;;  %p39_p4 = scmp.ge.s32.totalorder %s2762_s20, 2 }
  0x2b   : > { %p85_p5 = scmp.ne.s32.totalorder %s1983_s22, %s1979_s21  ;;  %p195_p6 = scmp.eq.s32.totalorder %s2121_s8, 15 }
  0x2c   : > { %p201_p8 = scmp.eq.s32.totalorder %s1608_s9, 15  ;;  %s2764_s20 = smov (%p39_p4, %s2762_s20), 0 }
  0x2d   : > { %2731 = sst [smem:[#allocation17_spill]] %s2764_s20  ;;  %p2183_p10 = por %p85_p5, %p58_p1 }
  0x2e   : > { %p2187_p12 = por %p195_p6, %p79_p0  ;;  %s41_s15 = ssub.s32 %s2015_s30, %s2764_s20 }
  0x2f   : > { %p2193_p7 = por %p201_p8, %p85_p5  ;;  %p42_p13 = scmp.eq.s32.totalorder %s41_s15, 0 }
  0x30   : > { %s2733_s14 = scalar_select %p2187_p12, 1, 0 }
  0x31   : > { %s2735_s16 = scalar_select %p2193_p7, 1, 0 }
  0x32   : > { %2734 = sst [smem:[#allocation18_spill]] %s2733_s14  ;;  %s69_s10 = sor.u32 %s68_s18, %s41_s15 }
  0x33   : > { %2736 = sst [smem:[#allocation19_spill]] %s2735_s16  ;;  %p70_p4 = scmp.eq.s32.totalorder %s69_s10, 0 }
  0x34   : > { %s266_s9 = sand.u32 1, %s2019_s7   ;;  %s2737_s0 = sadd.s32 1, %s1999_s26 }
  0x35   : > { %s2201_s5 = scalar_select %p42_p13, %s1999_s26, %s2737_s0  }
  0x36   : > { %s2204_s11 = scalar_select %p70_p4, %s1987_s23, %s72_s13  }
  0x37   : > { %s268_s21 = sand.u32 1, %s1987_s23   ;;  %s1616_s28 = sshll.u32 %s2011_s29, 2 }
  0x38   : > { %s1615_s6 = sshll.u32 %s268_s21, 2  ;;  %s1617_s14 = sshll.u32 %s2015_s30, 5 }
  0x39   : > { %s275_s20 = sadd.s32 %s1617_s14, %s1616_s28  ;;  %s270_s2 = scalar_lea.vmem [#allocation5], %s1615_s6 }
  0x3a   : > { %s280_s4 = sshll.u32 %s270_s2, 4  ;;  %s276_s3 = scalar_lea.hbm %s2700_s1, %s275_s20  ;;  %s281_s4 = int_to_ptr.vmem [resolvable:$true] %s280_s4 }
  0x3b   : > { %s278_s18 = sshll.u32 %s276_s3, 4  ;;  %p1688_p0 = pnand %p1696_p9, %p2172_p2  ;;  %s279_s18 = int_to_ptr.hbm [resolvable:$true] %s278_s18 }
  0x3c   : > { %s267_s0 = scalar_lea.sflag [#allocation6], %s266_s9  ;;  %289 = sbr.rel (%p2129_p3) target bundleno = 676 (0x2a4), region = 44 }
  0x3d   : > { %1690 = dma.hbm_to_vmem [thread:$0]  (!%p1688_p0), %s279_s18, 64, %s281_s4, %s267_s0  }
  0x3e   : > { %s291_s21 = sand.u32 (!%p2129_p3), 1, %s1995_s25  }
  0x3f   : > { %s1619_s6 = sshll.u32 (!%p2129_p3), %s291_s21, 8  ;;  %s292_s2 = scalar_lea.sflag (!%p2129_p3), [#allocation3], %s291_s21 }
  0x40   : > { %s2219_s28 = scalar_lea.vmem (!%p2129_p3), [#allocation2], %s1619_s6 }
  0x41   : > { %1962 = dma.done.wait (%p2149_p11), %s292_s2, 4096  }
  0x42   : > { %1964 = vsyncadd (%p2149_p11), %s292_s2, 4294963200  ;;  %s301_s3 = sand.u32 1, %s2121_s8   ;;  %s2227_s4 = sand.u32 1, %s1983_s22  }
  0x43   : > { %s1620_s27 = sshll.u32 %s2227_s4, 2  ;;  %s302_s12 = scalar_lea.sflag [#allocation6], %s301_s3 }
  0x44   : > { %s2230_s20 = scalar_lea.vmem [#allocation5], %s1620_s27 }
  0x45   : > { %1966 = dma.done.wait (%p2183_p10), %s302_s12, 64  }
  0x46   : > { %1968 = vsyncadd (%p2183_p10), %s302_s12, 4294967232 }
  0x47   : > { %1970 = dma.done.wait (%p58_p1), [#allocation6], 8192  }
  0x48   : > { %1972 = vsyncadd (%p58_p1), [#allocation6], 4294959104  ;;  %v2026_v0 = vmov 0   ;;  %s2738_s17 = sld [smem:[#allocation22_spill]]  ;;  %s1469_s15 = scalar_lea.sflag [#allocation4], %s2227_s4 }
  0x49   : > { %1798 = vset.pattern.permute.xlu2 %v2026_v0  ;;  %1797 = vset.pattern.permute.xlu1 %v2026_v0  ;;  %s2739_s13 = sld [smem:[#allocation14_spill]] }
  0x4a   : > { %1796 = vset.pattern.permute.xlu0 %v2026_v0  ;;  %s2740_s14 = sld [smem:[#allocation23_spill]] }
  0x4b   : > { %s2741_s16 = sld [smem:[#allocation21_spill]] }
  0x4e   : > { %v400_v1 = vld [vmem:[%s2738_s17 + $0x78] sm:$0xff]  ;;  %v399_v2 = vld [vmem:[%s2738_s17 + $0x70] sm:$0xff]  ;;  %v398_v3 = vld [vmem:[%s2738_s17 + $0x68] sm:$0xff] }
  0x4f   : > { %497 = vperm.xlu0 %1796, %v400_v1   ;;  %492 = vperm.xlu1 %1797, %v399_v2   ;;  %v416_v4 = vld [vmem:[%s2738_s17 + $0xf8] sm:$0xff]  ;;  %v415_v5 = vld [vmem:[%s2738_s17 + $0xf0] sm:$0xff]  ;;  %v414_v6 = vld [vmem:[%s2738_s17 + $0xe8] sm:$0xff]  ;;  %s1623_s3 = sshll.u32 %s2739_s13, 3  ;;  %s1632_s9 = sshll.u32 %s2739_s13, 2 }
  0x50   : > { %487 = vperm.xlu2 %1798, %v398_v3   ;;  %v413_v7 = vld [vmem:[%s2738_s17 + $0xe0] sm:$0xff]  ;;  %v396_v9 = vld [vmem:[%s2738_s17 + $0x58] sm:$0xff]  ;;  %v395_v11 = vld [vmem:[%s2738_s17 + $0x50] sm:$0xff]  ;;  %s348_s27 = scvt.s32.f32 %s1623_s3  ;;  %s2743_s3 = sld [smem:[#allocation25_spill]] }
  0x51   : > { %v397_v8 = vld [vmem:[%s2738_s17 + $0x60] sm:$0xff]  ;;  %v412_v10 = vld [vmem:[%s2738_s17 + $0xd8] sm:$0xff]  ;;  %v411_v12 = vld [vmem:[%s2738_s17 + $0xd0] sm:$0xff] }
  0x52   : > { %v410_v13 = vld [vmem:[%s2738_s17 + $0xc8] sm:$0xff]  ;;  %v393_v15 = vld [vmem:[%s2738_s17 + $0x40] sm:$0xff]  ;;  %v392_v17 = vld [vmem:[%s2738_s17 + $0x38] sm:$0xff]  ;;  %v350_v34 = vstv %s348_s27 }
  0x53   : > { %v394_v14 = vld [vmem:[%s2738_s17 + $0x48] sm:$0xff]  ;;  %v409_v16 = vld [vmem:[%s2738_s17 + $0xc0] sm:$0xff]  ;;  %v408_v18 = vld [vmem:[%s2738_s17 + $0xb8] sm:$0xff] }
  0x54   : > { %v407_v19 = vld [vmem:[%s2738_s17 + $0xb0] sm:$0xff]  ;;  %v390_v21 = vld [vmem:[%s2738_s17 + $0x28] sm:$0xff]  ;;  %v389_v23 = vld [vmem:[%s2738_s17 + $0x20] sm:$0xff] }
  0x55   : > { %v391_v20 = vld [vmem:[%s2738_s17 + $0x30] sm:$0xff]  ;;  %v406_v22 = vld [vmem:[%s2738_s17 + $0xa8] sm:$0xff]  ;;  %v405_v24 = vld [vmem:[%s2738_s17 + $0xa0] sm:$0xff] }
  0x56   : > { %v404_v25 = vld [vmem:[%s2738_s17 + $0x98] sm:$0xff]  ;;  %v387_v27 = vld [vmem:[%s2738_s17 + $0x10] sm:$0xff]  ;;  %v386_v29 = vld [vmem:[%s2738_s17 + $0x8] sm:$0xff] }
  0x57   : > { %577 = vperm.xlu0 %1796, %v416_v4   ;;  %572 = vperm.xlu1 %1797, %v415_v5   ;;  %v388_v26 = vld [vmem:[%s2738_s17 + $0x18] sm:$0xff]  ;;  %v403_v28 = vld [vmem:[%s2738_s17 + $0x90] sm:$0xff]  ;;  %v402_v30 = vld [vmem:[%s2738_s17 + $0x88] sm:$0xff] }
  0x58   : > { %567 = vperm.xlu2 %1798, %v414_v6   ;;  %v401_v31 = vld [vmem:[%s2738_s17 + $0x80] sm:$0xff]  ;;  %v368_v55 = vld [vmem:[%s2741_s16 + $0x78] sm:$0xff]  ;;  %v366_v58 = vld [vmem:[%s2741_s16 + $0x68] sm:$0xff] }
  0x59   : > { %v385_v32 = vld [vmem:[%s2738_s17] sm:$0xff]  ;;  %v367_v61 = vld [vmem:[%s2741_s16 + $0x70] sm:$0xff] }
  0x5a   : > { %v349_v35 = vld [vmem:[%s2740_s14] sm:$0x1] }
  0x5b   : > { %v351_v36 = vadd.f32 %v350_v34, %v349_v35 }
  0x5d   : > { %v352_v38 = vmul.f32 0.23809524, %v351_v36 }
  0x5f   : > { %562 = vperm.xlu1 %1797, %v413_v7   ;;  %482 = vperm.xlu0 %1796, %v397_v8   ;;  %v2340_v39 = vperm.slane %v352_v38, 0 }
  0x60   : > { %477 = vperm.xlu2 %1798, %v396_v9  }
  0x67   : > { %557 = vperm.xlu0 %1796, %v412_v10   ;;  %472 = vperm.xlu1 %1797, %v395_v11   ;;  %v384_v10 = vld [vmem:[%s2741_s16 + $0xf8] sm:$0xff] }
  0x68   : > { %552 = vperm.xlu2 %1798, %v411_v12  }
  0x6f   : > { %547 = vperm.xlu1 %1797, %v410_v13   ;;  %467 = vperm.xlu0 %1796, %v394_v14  }
  0x70   : > { %462 = vperm.xlu2 %1798, %v393_v15  }
  0x77   : > { %542 = vperm.xlu0 %1796, %v409_v16   ;;  %457 = vperm.xlu1 %1797, %v392_v17   ;;  %v383_v17 = vld [vmem:[%s2741_s16 + $0xf0] sm:$0xff] }
  0x78   : > { %537 = vperm.xlu2 %1798, %v408_v18  }
  0x7f   : > { %532 = vperm.xlu1 %1797, %v407_v19   ;;  %452 = vperm.xlu0 %1796, %v391_v20  }
  0x80   : > { %447 = vperm.xlu2 %1798, %v390_v21  }
  0x87   : > { %527 = vperm.xlu0 %1796, %v406_v22   ;;  %442 = vperm.xlu1 %1797, %v389_v23   ;;  %v382_v22 = vld [vmem:[%s2741_s16 + $0xe8] sm:$0xff] }
  0x88   : > { %522 = vperm.xlu2 %1798, %v405_v24  }
  0x8f   : > { %517 = vperm.xlu1 %1797, %v404_v25   ;;  %437 = vperm.xlu0 %1796, %v388_v26  }
  0x90   : > { %432 = vperm.xlu2 %1798, %v387_v27  }
  0x97   : > { %512 = vperm.xlu0 %1796, %v403_v28   ;;  %427 = vperm.xlu1 %1797, %v386_v29  }
  0x98   : > { %507 = vperm.xlu2 %1798, %v402_v30  }
  0x9f   : > { %502 = vperm.xlu1 %1797, %v401_v31   ;;  %422 = vperm.xlu0 %1796, %v385_v32   ;;  %v365_v31 = vld [vmem:[%s2741_s16 + $0x60] sm:$0xff] }
  0xa0   : > { %v381_v32 = vld [vmem:[%s2741_s16 + $0xe0] sm:$0xff] }
  0xaa   : > { %v488_v33 = vpop.permute.xlu2 %487 }
  0xab   : > { %v593_v40 = vsub.f32 %v2340_v39, %v488_v33 }
  0xad   : > { %v625_v42 = vand.u32 2147483647, %v593_v40  ;;  %v364_v40 = vld [vmem:[%s2741_s16 + $0x58] sm:$0xff] }
  0xaf   : > { %v657_v47 = vsub.f32 1.0, %v625_v42 }
  0xb1   : > { %v689_v54 = vmax.f32 %v657_v47, 0.0 }
  0xb2   : > { %v568_v37 = vpop.permute.xlu2 %567 }
  0xb3   : > { %v609_v50 = vsub.f32 %v2340_v39, %v568_v37  ;;  %v721_v2 = vmul.f32 %v689_v54, %v366_v58  ;;  %v380_v54 = vld [vmem:[%s2741_s16 + $0xd8] sm:$0xff] }
  0xb5   : > { %v641_v62 = vand.u32 2147483647, %v609_v50 }
  0xb7   : > { %v673_v7 = vsub.f32 1.0, %v641_v62 }
  0xb9   : > { %v705_v18 = vmax.f32 %v673_v7, 0.0 }
  0xba   : > { %v478_v41 = vpop.permute.xlu2 %477 }
  0xbb   : > { %v591_v3 = vsub.f32 %v2340_v39, %v478_v41  ;;  %v737_v30 = vmul.f32 %v705_v18, %v382_v22  ;;  %v361_v18 = vld [vmem:[%s2741_s16 + $0x40] sm:$0xff] }
  0xbd   : > { %v623_v11 = vand.u32 2147483647, %v591_v3 }
  0xbf   : > { %v655_v23 = vsub.f32 1.0, %v623_v11  ;;  %v378_v11 = vld [vmem:[%s2741_s16 + $0xc8] sm:$0xff] }
  0xc1   : > { %v498_v43 = vpop.permute.xlu0 %497  ;;  %v493_v44 = vpop.permute.xlu1 %492  ;;  %v687_v33 = vmax.f32 %v655_v23, 0.0 }
  0xc2   : > { %v595_v45 = vsub.f32 %v2340_v39, %v498_v43  ;;  %v594_v46 = vsub.f32 %v2340_v39, %v493_v44  ;;  %v553_v53 = vpop.permute.xlu2 %552 }
  0xc3   : > { %v606_v27 = vsub.f32 %v2340_v39, %v553_v53  ;;  %v363_v53 = vld [vmem:[%s2741_s16 + $0x50] sm:$0xff] }
  0xc4   : > { %v627_v48 = vand.u32 2147483647, %v595_v45  ;;  %v626_v49 = vand.u32 2147483647, %v594_v46 }
  0xc5   : > { %v638_v36 = vand.u32 2147483647, %v606_v27 }
  0xc6   : > { %v659_v51 = vsub.f32 1.0, %v627_v48  ;;  %v658_v52 = vsub.f32 1.0, %v626_v49  ;;  %v719_v49 = vmul.f32 %v687_v33, %v364_v40 }
  0xc7   : > { %v670_v50 = vsub.f32 1.0, %v638_v36 }
  0xc8   : > { %v691_v56 = vmax.f32 %v659_v51, 0.0  ;;  %v690_v57 = vmax.f32 %v658_v52, 0.0 }
  0xc9   : > { %v578_v59 = vpop.permute.xlu0 %577  ;;  %v573_v60 = vpop.permute.xlu1 %572  ;;  %v702_v58 = vmax.f32 %v670_v50, 0.0 }
  0xca   : > { %v611_v63 = vsub.f32 %v2340_v39, %v578_v59  ;;  %v610_v0 = vsub.f32 %v2340_v39, %v573_v60  ;;  %v723_v1 = vmul.f32 %v691_v56, %v368_v55  ;;  %v722_v6 = vmul.f32 %v690_v57, %v367_v61  ;;  %v463_v14 = vpop.permute.xlu2 %462 }
  0xcb   : > { %v588_v46 = vsub.f32 %v2340_v39, %v463_v14 }
  0xcc   : > { %v643_v4 = vand.u32 2147483647, %v611_v63  ;;  %v642_v5 = vand.u32 2147483647, %v610_v0  ;;  %772 = vmatpush.msra.mxu0 %v723_v1  ;;  %1638 = vmatpush.msra.mxu2 %v723_v1  ;;  %v379_v1 = vld [vmem:[%s2741_s16 + $0xd0] sm:$0xff] }
  0xcd   : > { %v620_v55 = vand.u32 2147483647, %v588_v46  ;;  %v734_v7 = vmul.f32 %v702_v58, %v379_v1 }
  0xce   : > { %v675_v8 = vsub.f32 1.0, %v643_v4  ;;  %v674_v9 = vsub.f32 1.0, %v642_v5  ;;  %773 = vmatpush.msra.mxu0 %v722_v6  ;;  %1639 = vmatpush.msra.mxu2 %v722_v6 }
  0xd0   : > { %v707_v12 = vmax.f32 %v675_v8, 0.0  ;;  %v706_v13 = vmax.f32 %v674_v9, 0.0  ;;  %774 = vmatpush.msra.mxu0 %v721_v2  ;;  %1640 = vmatpush.msra.mxu2 %v721_v2  ;;  %v652_v2 = vsub.f32 1.0, %v620_v55 }
  0xd1   : > { %v563_v15 = vpop.permute.xlu1 %562  ;;  %v483_v16 = vpop.permute.xlu0 %482 }
  0xd2   : > { %v608_v19 = vsub.f32 %v2340_v39, %v563_v15  ;;  %v592_v20 = vsub.f32 %v2340_v39, %v483_v16  ;;  %v739_v21 = vmul.f32 %v707_v12, %v384_v10  ;;  %v738_v26 = vmul.f32 %v706_v13, %v383_v17  ;;  %v538_v41 = vpop.permute.xlu2 %537  ;;  %v362_v10 = vld [vmem:[%s2741_s16 + $0x48] sm:$0xff] }
  0xd3   : > { %v603_v6 = vsub.f32 %v2340_v39, %v538_v41  ;;  %v684_v12 = vmax.f32 %v652_v2, 0.0 }
  0xd4   : > { %v640_v24 = vand.u32 2147483647, %v608_v19  ;;  %v624_v25 = vand.u32 2147483647, %v592_v20  ;;  %837 = vmatpush.msra.mxu1 %v739_v21  ;;  %1654 = vmatpush.msra.mxu3 %v739_v21 }
  0xd5   : > { %v635_v15 = vand.u32 2147483647, %v603_v6 }
  0xd6   : > { %v672_v28 = vsub.f32 1.0, %v640_v24  ;;  %v656_v29 = vsub.f32 1.0, %v624_v25  ;;  %838 = vmatpush.msra.mxu1 %v738_v26  ;;  %1655 = vmatpush.msra.mxu3 %v738_v26  ;;  %v716_v26 = vmul.f32 %v684_v12, %v361_v18 }
  0xd7   : > { %v667_v27 = vsub.f32 1.0, %v635_v15 }
  0xd8   : > { %v704_v34 = vmax.f32 %v672_v28, 0.0  ;;  %v688_v35 = vmax.f32 %v656_v29, 0.0  ;;  %839 = vmatpush.msra.mxu1 %v737_v30  ;;  %1656 = vmatpush.msra.mxu3 %v737_v30 }
  0xd9   : > { %v558_v37 = vpop.permute.xlu0 %557  ;;  %v473_v38 = vpop.permute.xlu1 %472  ;;  %v699_v36 = vmax.f32 %v667_v27, 0.0 }
  0xda   : > { %v607_v42 = vsub.f32 %v2340_v39, %v558_v37  ;;  %v590_v43 = vsub.f32 %v2340_v39, %v473_v38  ;;  %v720_v44 = vmul.f32 %v688_v35, %v365_v31  ;;  %v736_v45 = vmul.f32 %v704_v34, %v381_v32  ;;  %v448_v3 = vpop.permute.xlu2 %447  ;;  %v360_v31 = vld [vmem:[%s2741_s16 + $0x38] sm:$0xff]  ;;  %v377_v32 = vld [vmem:[%s2741_s16 + $0xc0] sm:$0xff] }
  0xdb   : > { %v585_v23 = vsub.f32 %v2340_v39, %v448_v3 }
  0xdc   : > { %v639_v47 = vand.u32 2147483647, %v607_v42  ;;  %v622_v48 = vand.u32 2147483647, %v590_v43  ;;  %775 = vmatpush.msra.mxu0 %v720_v44  ;;  %1641 = vmatpush.msra.mxu2 %v720_v44  ;;  %v376_v44 = vld [vmem:[%s2741_s16 + $0xb8] sm:$0xff] }
  0xdd   : > { %840 = vmatpush.msra.mxu1 %v736_v45  ;;  %1657 = vmatpush.msra.mxu3 %v736_v45  ;;  %v617_v33 = vand.u32 2147483647, %v585_v23 }
  0xde   : > { %v671_v51 = vsub.f32 1.0, %v639_v47  ;;  %v654_v52 = vsub.f32 1.0, %v622_v48  ;;  %776 = vmatpush.msra.mxu0 %v719_v49  ;;  %1642 = vmatpush.msra.mxu2 %v719_v49  ;;  %v731_v49 = vmul.f32 %v699_v36, %v376_v44 }
  0xdf   : > { %v649_v45 = vsub.f32 1.0, %v617_v33 }
  0xe0   : > { %v703_v56 = vmax.f32 %v671_v51, 0.0  ;;  %v686_v57 = vmax.f32 %v654_v52, 0.0  ;;  %v359_v52 = vld [vmem:[%s2741_s16 + $0x30] sm:$0xff] }
  0xe1   : > { %v548_v59 = vpop.permute.xlu1 %547  ;;  %v468_v60 = vpop.permute.xlu0 %467 }
  0xe2   : > { %v605_v61 = vsub.f32 %v2340_v39, %v548_v59  ;;  %v589_v62 = vsub.f32 %v2340_v39, %v468_v60  ;;  %v718_v63 = vmul.f32 %v686_v57, %v363_v53  ;;  %v735_v0 = vmul.f32 %v703_v56, %v380_v54  ;;  %v523_v28 = vpop.permute.xlu2 %522  ;;  %v375_v53 = vld [vmem:[%s2741_s16 + $0xb0] sm:$0xff] }
  0xe3   : > { %v600_v48 = vsub.f32 %v2340_v39, %v523_v28  ;;  %v681_v54 = vmax.f32 %v649_v45, 0.0 }
  0xe4   : > { %v637_v4 = vand.u32 2147483647, %v605_v61  ;;  %v621_v5 = vand.u32 2147483647, %v589_v62  ;;  %777 = vmatpush.msra.mxu0 %v718_v63  ;;  %1643 = vmatpush.msra.mxu2 %v718_v63  ;;  %v358_v61 = vld [vmem:[%s2741_s16 + $0x28] sm:$0xff] }
  0xe5   : > { %841 = vmatpush.msra.mxu1 %v735_v0  ;;  %1658 = vmatpush.msra.mxu3 %v735_v0  ;;  %v632_v58 = vand.u32 2147483647, %v600_v48 }
  0xe6   : > { %v669_v8 = vsub.f32 1.0, %v637_v4  ;;  %v653_v9 = vsub.f32 1.0, %v621_v5  ;;  %v713_v5 = vmul.f32 %v681_v54, %v358_v61  ;;  %v370_v61 = vld [vmem:[%s2741_s16 + $0x88] sm:$0xff] }
  0xe7   : > { %842 = vmatpush.msra.mxu1 %v734_v7  ;;  %1659 = vmatpush.msra.mxu3 %v734_v7  ;;  %v664_v6 = vsub.f32 1.0, %v632_v58 }
  0xe8   : > { %v701_v13 = vmax.f32 %v669_v8, 0.0  ;;  %v685_v14 = vmax.f32 %v653_v9, 0.0  ;;  %v357_v9 = vld [vmem:[%s2741_s16 + $0x20] sm:$0xff] }
  0xe9   : > { %v543_v16 = vpop.permute.xlu0 %542  ;;  %v458_v17 = vpop.permute.xlu1 %457 }
  0xea   : > { %v604_v19 = vsub.f32 %v2340_v39, %v543_v16  ;;  %v587_v20 = vsub.f32 %v2340_v39, %v458_v17  ;;  %v717_v21 = vmul.f32 %v685_v14, %v362_v10  ;;  %v733_v22 = vmul.f32 %v701_v13, %v378_v11  ;;  %v433_v55 = vpop.permute.xlu2 %432  ;;  %v374_v10 = vld [vmem:[%s2741_s16 + $0xa8] sm:$0xff] }
  0xeb   : > { %v582_v2 = vsub.f32 %v2340_v39, %v433_v55  ;;  %v696_v14 = vmax.f32 %v664_v6, 0.0 }
  0xec   : > { %v636_v24 = vand.u32 2147483647, %v604_v19  ;;  %v619_v25 = vand.u32 2147483647, %v587_v20  ;;  %778 = vmatpush.msra.mxu0 %v717_v21  ;;  %1644 = vmatpush.msra.mxu2 %v717_v21 }
  0xed   : > { %843 = vmatpush.msra.mxu1 %v733_v22  ;;  %1660 = vmatpush.msra.mxu3 %v733_v22  ;;  %v614_v11 = vand.u32 2147483647, %v582_v2  ;;  %v373_v22 = vld [vmem:[%s2741_s16 + $0xa0] sm:$0xff] }
  0xee   : > { %v668_v29 = vsub.f32 1.0, %v636_v24  ;;  %v651_v30 = vsub.f32 1.0, %v619_v25  ;;  %779 = vmatpush.msra.mxu0 %v716_v26  ;;  %1645 = vmatpush.msra.mxu2 %v716_v26  ;;  %v728_v27 = vmul.f32 %v696_v14, %v373_v22  ;;  %v746_v14 = vld [vmem:[%s2219_s28 + $0x30] sm:$0xff]  ;;  %v964_v22 = vld [vmem:[#allocation7 + $0x1f0] sm:$0xff] }
  0xef   : > { %v646_v23 = vsub.f32 1.0, %v614_v11  ;;  %v743_v11 = vld [vmem:[%s2219_s28 + $0x18] sm:$0xff] }
  0xf0   : > { %v700_v34 = vmax.f32 %v668_v29, 0.0  ;;  %v683_v35 = vmax.f32 %v651_v30, 0.0  ;;  %v356_v30 = vld [vmem:[%s2741_s16 + $0x18] sm:$0xff] }
  0xf1   : > { %v533_v37 = vpop.permute.xlu1 %532  ;;  %v453_v38 = vpop.permute.xlu0 %452 }
  0xf2   : > { %v602_v40 = vsub.f32 %v2340_v39, %v533_v37  ;;  %v586_v41 = vsub.f32 %v2340_v39, %v453_v38  ;;  %v715_v42 = vmul.f32 %v683_v35, %v360_v31  ;;  %v732_v43 = vmul.f32 %v700_v34, %v377_v32  ;;  %v508_v17 = vpop.permute.xlu2 %507  ;;  %v372_v31 = vld [vmem:[%s2741_s16 + $0x98] sm:$0xff]  ;;  %v355_v38 = vld [vmem:[%s2741_s16 + $0x10] sm:$0xff] }
  0xf3   : > { %v597_v26 = vsub.f32 %v2340_v39, %v508_v17  ;;  %v678_v32 = vmax.f32 %v646_v23, 0.0  ;;  %v757_v17 = vld [vmem:[%s2219_s28 + $0x88] sm:$0xff]  ;;  %v965_v23 = vld [vmem:[#allocation7 + $0x1f8] sm:$0xff] }
  0xf4   : > { %v634_v46 = vand.u32 2147483647, %v602_v40  ;;  %v618_v47 = vand.u32 2147483647, %v586_v41  ;;  %780 = vmatpush.msra.mxu0 %v715_v42  ;;  %1646 = vmatpush.msra.mxu2 %v715_v42 }
  0xf5   : > { %844 = vmatpush.msra.mxu1 %v732_v43  ;;  %1661 = vmatpush.msra.mxu3 %v732_v43  ;;  %v629_v35 = vand.u32 2147483647, %v597_v26  ;;  %v960_v26 = vld [vmem:[#allocation7 + $0x1d0] sm:$0xff] }
  0xf6   : > { %v666_v50 = vsub.f32 1.0, %v634_v46  ;;  %v650_v51 = vsub.f32 1.0, %v618_v47  ;;  %v710_v46 = vmul.f32 %v678_v32, %v355_v38  ;;  %v956_v32 = vld [vmem:[#allocation7 + $0x1b0] sm:$0xff]  ;;  %v947_v38 = vld [vmem:[#allocation7 + $0x168] sm:$0xff] }
  0xf7   : > { %845 = vmatpush.msra.mxu1 %v731_v49  ;;  %1662 = vmatpush.msra.mxu3 %v731_v49  ;;  %v661_v47 = vsub.f32 1.0, %v629_v35  ;;  %v957_v35 = vld [vmem:[#allocation7 + $0x1b8] sm:$0xff] }
  0xf8   : > { %v698_v56 = vmax.f32 %v666_v50, 0.0  ;;  %v682_v57 = vmax.f32 %v650_v51, 0.0  ;;  %v354_v50 = vld [vmem:[%s2741_s16 + $0x8] sm:$0xff]  ;;  %v371_v51 = vld [vmem:[%s2741_s16 + $0x90] sm:$0xff] }
  0xf9   : > { %v528_v59 = vpop.permute.xlu0 %527  ;;  %v443_v60 = vpop.permute.xlu1 %442  ;;  %v693_v54 = vmax.f32 %v661_v47, 0.0  ;;  %v751_v47 = vld [vmem:[%s2219_s28 + $0x58] sm:$0xff] }
  0xfa   : > { %v601_v62 = vsub.f32 %v2340_v39, %v528_v59  ;;  %v584_v63 = vsub.f32 %v2340_v39, %v443_v60  ;;  %v714_v0 = vmul.f32 %v682_v57, %v359_v52  ;;  %v730_v1 = vmul.f32 %v698_v56, %v375_v53 }
  0xfc   : > { %v633_v3 = vand.u32 2147483647, %v601_v62  ;;  %v616_v4 = vand.u32 2147483647, %v584_v63  ;;  %781 = vmatpush.msra.mxu0 %v714_v0  ;;  %1647 = vmatpush.msra.mxu2 %v714_v0  ;;  %v725_v0 = vmul.f32 %v693_v54, %v370_v61  ;;  %v934_v54 = vld [vmem:[#allocation7 + $0x100] sm:$0xff]  ;;  %v932_v61 = vld [vmem:[#allocation7 + $0xf0] sm:$0xff] }
  0xfd   : > { %846 = vmatpush.msra.mxu1 %v730_v1  ;;  %1663 = vmatpush.msra.mxu3 %v730_v1 }
  0xfe   : > { %v665_v7 = vsub.f32 1.0, %v633_v3  ;;  %v648_v8 = vsub.f32 1.0, %v616_v4  ;;  %782 = vmatpush.msra.mxu0 %v713_v5  ;;  %1648 = vmatpush.msra.mxu2 %v713_v5  ;;  %v369_v3 = vld [vmem:[%s2741_s16 + $0x80] sm:$0xff] }
 0x100   : > { %v697_v12 = vmax.f32 %v665_v7, 0.0  ;;  %v680_v13 = vmax.f32 %v648_v8, 0.0  ;;  %v740_v8 = vld [vmem:[%s2219_s28] sm:$0xff] }
 0x101   : > { %v518_v15 = vpop.permute.xlu1 %517  ;;  %v438_v16 = vpop.permute.xlu0 %437 }
 0x102   : > { %v599_v18 = vsub.f32 %v2340_v39, %v518_v15  ;;  %v583_v19 = vsub.f32 %v2340_v39, %v438_v16  ;;  %v712_v20 = vmul.f32 %v680_v13, %v357_v9  ;;  %v729_v21 = vmul.f32 %v697_v12, %v374_v10  ;;  %v741_v9 = vld [vmem:[%s2219_s28 + $0x8] sm:$0xff]  ;;  %v742_v10 = vld [vmem:[%s2219_s28 + $0x10] sm:$0xff]  ;;  %v744_v12 = vld [vmem:[%s2219_s28 + $0x20] sm:$0xff] }
 0x103   : > { %v745_v13 = vld [vmem:[%s2219_s28 + $0x28] sm:$0xff]  ;;  %v747_v15 = vld [vmem:[%s2219_s28 + $0x38] sm:$0xff]  ;;  %v756_v16 = vld [vmem:[%s2219_s28 + $0x80] sm:$0xff] }
 0x104   : > { %v631_v24 = vand.u32 2147483647, %v599_v18  ;;  %v615_v25 = vand.u32 2147483647, %v583_v19  ;;  %783 = vmatpush.msra.mxu0 %v712_v20  ;;  %1649 = vmatpush.msra.mxu2 %v712_v20  ;;  %v962_v18 = vld [vmem:[#allocation7 + $0x1e0] sm:$0xff]  ;;  %v963_v19 = vld [vmem:[#allocation7 + $0x1e8] sm:$0xff] }
 0x105   : > { %847 = vmatpush.msra.mxu1 %v729_v21  ;;  %1664 = vmatpush.msra.mxu3 %v729_v21  ;;  %v958_v20 = vld [vmem:[#allocation7 + $0x1c0] sm:$0xff]  ;;  %v959_v21 = vld [vmem:[#allocation7 + $0x1c8] sm:$0xff] }
 0x106   : > { %v663_v28 = vsub.f32 1.0, %v631_v24  ;;  %v647_v29 = vsub.f32 1.0, %v615_v25  ;;  %v954_v24 = vld [vmem:[#allocation7 + $0x1a0] sm:$0xff]  ;;  %v955_v25 = vld [vmem:[#allocation7 + $0x1a8] sm:$0xff] }
 0x107   : > { %848 = vmatpush.msra.mxu1 %v728_v27  ;;  %1665 = vmatpush.msra.mxu3 %v728_v27  ;;  %v748_v27 = vld [vmem:[%s2219_s28 + $0x40] sm:$0xff] }
 0x108   : > { %v695_v33 = vmax.f32 %v663_v28, 0.0  ;;  %v679_v34 = vmax.f32 %v647_v29, 0.0  ;;  %v749_v28 = vld [vmem:[%s2219_s28 + $0x48] sm:$0xff]  ;;  %v961_v29 = vld [vmem:[#allocation7 + $0x1d8] sm:$0xff] }
 0x109   : > { %v513_v36 = vpop.permute.xlu0 %512  ;;  %v428_v37 = vpop.permute.xlu1 %427 }
 0x10a   : > { %v598_v40 = vsub.f32 %v2340_v39, %v513_v36  ;;  %v581_v41 = vsub.f32 %v2340_v39, %v428_v37  ;;  %v711_v42 = vmul.f32 %v679_v34, %v356_v30  ;;  %v727_v43 = vmul.f32 %v695_v33, %v372_v31  ;;  %v758_v30 = vld [vmem:[%s2219_s28 + $0x90] sm:$0xff]  ;;  %v759_v31 = vld [vmem:[%s2219_s28 + $0x98] sm:$0xff]  ;;  %v950_v33 = vld [vmem:[#allocation7 + $0x180] sm:$0xff] }
 0x10b   : > { %v951_v34 = vld [vmem:[#allocation7 + $0x188] sm:$0xff]  ;;  %v952_v36 = vld [vmem:[#allocation7 + $0x190] sm:$0xff]  ;;  %v946_v37 = vld [vmem:[#allocation7 + $0x160] sm:$0xff] }
 0x10c   : > { %v630_v44 = vand.u32 2147483647, %v598_v40  ;;  %v613_v45 = vand.u32 2147483647, %v581_v41  ;;  %784 = vmatpush.msra.mxu0 %v711_v42  ;;  %1650 = vmatpush.msra.mxu2 %v711_v42  ;;  %v953_v40 = vld [vmem:[#allocation7 + $0x198] sm:$0xff]  ;;  %v948_v41 = vld [vmem:[#allocation7 + $0x170] sm:$0xff] }
 0x10d   : > { %849 = vmatpush.msra.mxu1 %v727_v43  ;;  %1666 = vmatpush.msra.mxu3 %v727_v43  ;;  %v942_v42 = vld [vmem:[#allocation7 + $0x140] sm:$0xff]  ;;  %v943_v43 = vld [vmem:[#allocation7 + $0x148] sm:$0xff] }
 0x10e   : > { %v662_v48 = vsub.f32 1.0, %v630_v44  ;;  %v645_v49 = vsub.f32 1.0, %v613_v45  ;;  %785 = vmatpush.msra.mxu0 %v710_v46  ;;  %1651 = vmatpush.msra.mxu2 %v710_v46  ;;  %v949_v44 = vld [vmem:[#allocation7 + $0x178] sm:$0xff]  ;;  %v944_v45 = vld [vmem:[#allocation7 + $0x150] sm:$0xff]  ;;  %v750_v46 = vld [vmem:[%s2219_s28 + $0x50] sm:$0xff] }
 0x110   : > { %v694_v52 = vmax.f32 %v662_v48, 0.0  ;;  %v677_v53 = vmax.f32 %v645_v49, 0.0  ;;  %v760_v48 = vld [vmem:[%s2219_s28 + $0xa0] sm:$0xff]  ;;  %v761_v49 = vld [vmem:[%s2219_s28 + $0xa8] sm:$0xff] }
 0x111   : > { %v503_v55 = vpop.permute.xlu1 %502  ;;  %v423_v56 = vpop.permute.xlu0 %422 }
 0x112   : > { %v596_v57 = vsub.f32 %v2340_v39, %v503_v55  ;;  %v580_v58 = vsub.f32 %v2340_v39, %v423_v56  ;;  %v709_v59 = vmul.f32 %v677_v53, %v354_v50  ;;  %v726_v60 = vmul.f32 %v694_v52, %v371_v51  ;;  %v353_v39 = vld [vmem:[%s2741_s16] sm:$0xff]  ;;  %v938_v50 = vld [vmem:[#allocation7 + $0x120] sm:$0xff]  ;;  %v939_v51 = vld [vmem:[#allocation7 + $0x128] sm:$0xff] }
 0x113   : > { %v945_v52 = vld [vmem:[#allocation7 + $0x158] sm:$0xff]  ;;  %v940_v53 = vld [vmem:[#allocation7 + $0x130] sm:$0xff]  ;;  %v935_v55 = vld [vmem:[#allocation7 + $0x108] sm:$0xff] }
 0x114   : > { %v628_v62 = vand.u32 2147483647, %v596_v57  ;;  %v612_v63 = vand.u32 2147483647, %v580_v58  ;;  %786 = vmatpush.msra.mxu0 %v709_v59  ;;  %1652 = vmatpush.msra.mxu2 %v709_v59  ;;  %v941_v56 = vld [vmem:[#allocation7 + $0x138] sm:$0xff]  ;;  %v936_v57 = vld [vmem:[#allocation7 + $0x110] sm:$0xff] }
 0x115   : > { %850 = vmatpush.msra.mxu1 %v726_v60  ;;  %1667 = vmatpush.msra.mxu3 %v726_v60  ;;  %v930_v58 = vld [vmem:[#allocation7 + $0xe0] sm:$0xff]  ;;  %v931_v59 = vld [vmem:[#allocation7 + $0xe8] sm:$0xff]  ;;  %v937_v60 = vld [vmem:[#allocation7 + $0x118] sm:$0xff] }
 0x116   : > { %v660_v1 = vsub.f32 1.0, %v628_v62  ;;  %v644_v2 = vsub.f32 1.0, %v612_v63  ;;  %v752_v62 = vld [vmem:[%s2219_s28 + $0x60] sm:$0xff]  ;;  %v753_v63 = vld [vmem:[%s2219_s28 + $0x68] sm:$0xff] }
 0x117   : > { %851 = vmatpush.msra.mxu1 %v725_v0  ;;  %1668 = vmatpush.msra.mxu3 %v725_v0  ;;  %v762_v0 = vld [vmem:[%s2219_s28 + $0xb0] sm:$0xff] }
 0x118   : > { %v692_v4 = vmax.f32 %v660_v1, 0.0  ;;  %v676_v5 = vmax.f32 %v644_v2, 0.0  ;;  %v763_v1 = vld [vmem:[%s2219_s28 + $0xb8] sm:$0xff]  ;;  %v926_v2 = vld [vmem:[#allocation7 + $0xc0] sm:$0xff] }
 0x11a   : > { %v708_v6 = vmul.f32 %v676_v5, %v353_v39  ;;  %v724_v7 = vmul.f32 %v692_v4, %v369_v3  ;;  %v927_v39 = vld [vmem:[#allocation7 + $0xc8] sm:$0xff]  ;;  %v933_v3 = vld [vmem:[#allocation7 + $0xf8] sm:$0xff]  ;;  %v928_v4 = vld [vmem:[#allocation7 + $0xd0] sm:$0xff] }
 0x11b   : > { %v922_v5 = vld [vmem:[#allocation7 + $0xa0] sm:$0xff] }
 0x11c   : > { %787 = vmatpush.msra.mxu0 %v708_v6  ;;  %1653 = vmatpush.msra.mxu2 %v708_v6  ;;  %v923_v6 = vld [vmem:[#allocation7 + $0xa8] sm:$0xff] }
 0x11d   : > { %852 = vmatpush.msra.mxu1 %v724_v7  ;;  %1669 = vmatpush.msra.mxu3 %v724_v7  ;;  %v929_v7 = vld [vmem:[#allocation7 + $0xd8] sm:$0xff] }
 0x11e   : > { %788 = vmatmul.f32.vlgmr.msra.gmra.mxu0 %v740_v8  ;;  %853 = vmatmul.f32.vlgmr.msra.gmra.mxu1 %v741_v9  ;;  %v924_v8 = vld [vmem:[#allocation7 + $0xb0] sm:$0xff]  ;;  %v918_v9 = vld [vmem:[#allocation7 + $0x80] sm:$0xff] }
 0x11f   : > { %812 = vmatmul.f32.vlgmr.msra.gmra.mxu2 %v756_v16  ;;  %877 = vmatmul.f32.vlgmr.msra.gmra.mxu3 %v757_v17  ;;  %v765_v16 = vld [vmem:[%s2219_s28 + $0xc8] sm:$0xff] }
 0x120   : > { %966 = vmatpush.msrb.mxu2 %v962_v18  ;;  %1031 = vmatpush.msrb.mxu3 %v963_v19  ;;  %v914_v17 = vld [vmem:[#allocation7 + $0x60] sm:$0xff]  ;;  %v915_v18 = vld [vmem:[#allocation7 + $0x68] sm:$0xff]  ;;  %v921_v19 = vld [vmem:[#allocation7 + $0x98] sm:$0xff] }
 0x121   : > { %1096 = vmatpush.msrb.mxu0 %v964_v22  ;;  %1161 = vmatpush.msrb.mxu1 %v965_v23  ;;  %v911_v22 = vld [vmem:[#allocation7 + $0x48] sm:$0xff]  ;;  %v917_v23 = vld [vmem:[#allocation7 + $0x78] sm:$0xff] }
 0x122   : > { %967 = vmatpush.msrb.mxu2 %v958_v20  ;;  %1032 = vmatpush.msrb.mxu3 %v959_v21  ;;  %v916_v20 = vld [vmem:[#allocation7 + $0x70] sm:$0xff]  ;;  %v910_v21 = vld [vmem:[#allocation7 + $0x40] sm:$0xff] }
 0x123   : > { %1097 = vmatpush.msrb.mxu0 %v960_v26  ;;  %1162 = vmatpush.msrb.mxu1 %v961_v29  ;;  %v907_v26 = vld [vmem:[#allocation7 + $0x28] sm:$0xff] }
 0x124   : > { %968 = vmatpush.msrb.mxu2 %v954_v24  ;;  %1033 = vmatpush.msrb.mxu3 %v955_v25  ;;  %v912_v24 = vld [vmem:[#allocation7 + $0x50] sm:$0xff]  ;;  %v906_v25 = vld [vmem:[#allocation7 + $0x20] sm:$0xff]  ;;  %v903_v29 = vld [vmem:[#allocation7 + $0x8] sm:$0xff] }
 0x125   : > { %1098 = vmatpush.msrb.mxu0 %v956_v32  ;;  %1163 = vmatpush.msrb.mxu1 %v957_v35  ;;  %v768_v32 = vld [vmem:[%s2219_s28 + $0xe0] sm:$0xff]  ;;  %v771_v35 = vld [vmem:[%s2219_s28 + $0xf8] sm:$0xff] }
 0x126   : > { %791 = vmatmul.f32.gmra.mxu0 %v742_v10  ;;  %856 = vmatmul.f32.gmra.mxu1 %v743_v11  ;;  %v919_v10 = vld [vmem:[#allocation7 + $0x88] sm:$0xff]  ;;  %v925_v11 = vld [vmem:[#allocation7 + $0xb8] sm:$0xff] }
 0x127   : > { %815 = vmatmul.f32.gmra.mxu2 %v758_v30  ;;  %880 = vmatmul.f32.gmra.mxu3 %v759_v31  ;;  %v766_v30 = vld [vmem:[%s2219_s28 + $0xd0] sm:$0xff]  ;;  %v767_v31 = vld [vmem:[%s2219_s28 + $0xd8] sm:$0xff] }
 0x128   : > { %969 = vmatpush.msrb.mxu2 %v950_v33  ;;  %1034 = vmatpush.msrb.mxu3 %v951_v34  ;;  %v769_v33 = vld [vmem:[%s2219_s28 + $0xe8] sm:$0xff]  ;;  %v770_v34 = vld [vmem:[%s2219_s28 + $0xf0] sm:$0xff] }
 0x129   : > { %1099 = vmatpush.msrb.mxu0 %v952_v36  ;;  %1164 = vmatpush.msrb.mxu1 %v953_v40  ;;  %v908_v36 = vld [vmem:[#allocation7 + $0x30] sm:$0xff]  ;;  %v905_v40 = vld [vmem:[#allocation7 + $0x18] sm:$0xff] }
 0x12a   : > { %970 = vmatpush.msrb.mxu2 %v946_v37  ;;  %1035 = vmatpush.msrb.mxu3 %v947_v38  ;;  %v909_v37 = vld [vmem:[#allocation7 + $0x38] sm:$0xff]  ;;  %v904_v38 = vld [vmem:[#allocation7 + $0x10] sm:$0xff] }
 0x12b   : > { %1100 = vmatpush.msrb.mxu0 %v948_v41  ;;  %1165 = vmatpush.msrb.mxu1 %v949_v44 }
 0x12c   : > { %971 = vmatpush.msrb.mxu2 %v942_v42  ;;  %1036 = vmatpush.msrb.mxu3 %v943_v43 }
 0x12d   : > { %1101 = vmatpush.msrb.mxu0 %v944_v45  ;;  %1166 = vmatpush.msrb.mxu1 %v945_v52 }
 0x12e   : > { %794 = vmatmul.f32.gmra.mxu0 %v744_v12  ;;  %859 = vmatmul.f32.gmra.mxu1 %v745_v13  ;;  %v920_v12 = vld [vmem:[#allocation7 + $0x90] sm:$0xff]  ;;  %v754_v13 = vld [vmem:[%s2219_s28 + $0x70] sm:$0xff] }
 0x12f   : > { %818 = vmatmul.f32.gmra.mxu2 %v760_v48  ;;  %883 = vmatmul.f32.gmra.mxu3 %v761_v49 }
 0x130   : > { %972 = vmatpush.msrb.mxu2 %v938_v50  ;;  %1037 = vmatpush.msrb.mxu3 %v939_v51 }
 0x131   : > { %1102 = vmatpush.msrb.mxu0 %v940_v53  ;;  %1167 = vmatpush.msrb.mxu1 %v941_v56 }
 0x132   : > { %973 = vmatpush.msrb.mxu2 %v934_v54  ;;  %1038 = vmatpush.msrb.mxu3 %v935_v55 }
 0x133   : > { %1103 = vmatpush.msrb.mxu0 %v936_v57  ;;  %1168 = vmatpush.msrb.mxu1 %v937_v60 }
 0x134   : > { %974 = vmatpush.msrb.mxu2 %v930_v58  ;;  %1039 = vmatpush.msrb.mxu3 %v931_v59 }
 0x135   : > { %1104 = vmatpush.msrb.mxu0 %v932_v61  ;;  %1169 = vmatpush.msrb.mxu1 %v933_v3 }
 0x136   : > { %797 = vmatmul.f32.gmra.mxu0 %v746_v14  ;;  %862 = vmatmul.f32.gmra.mxu1 %v747_v15  ;;  %v755_v14 = vld [vmem:[%s2219_s28 + $0x78] sm:$0xff]  ;;  %v764_v15 = vld [vmem:[%s2219_s28 + $0xc0] sm:$0xff]  ;;  %s2742_s28 = sld [smem:[#allocation15_spill]] }
 0x137   : > { %821 = vmatmul.f32.gmra.mxu2 %v762_v0  ;;  %886 = vmatmul.f32.gmra.mxu3 %v763_v1 }
 0x138   : > { %975 = vmatpush.msrb.mxu2 %v926_v2  ;;  %1040 = vmatpush.msrb.mxu3 %v927_v39 }
 0x139   : > { %1105 = vmatpush.msrb.mxu0 %v928_v4  ;;  %1170 = vmatpush.msrb.mxu1 %v929_v7 }
 0x13a   : > { %976 = vmatpush.msrb.mxu2 %v922_v5  ;;  %1041 = vmatpush.msrb.mxu3 %v923_v6 }
 0x13b   : > { %1106 = vmatpush.msrb.mxu0 %v924_v8  ;;  %1171 = vmatpush.msrb.mxu1 %v925_v11 }
 0x13c   : > { %977 = vmatpush.msrb.mxu2 %v918_v9  ;;  %1042 = vmatpush.msrb.mxu3 %v919_v10  ;;  %s1633_s18 = sshll.u32 %s2742_s28, 6 }
 0x13d   : > { %1107 = vmatpush.msrb.mxu0 %v920_v12  ;;  %1172 = vmatpush.msrb.mxu1 %v921_v19  ;;  %s2618_s0 = sadd.s32 %s1633_s18, %s1632_s9 }
 0x13e   : > { %800 = vmatmul.f32.gmra.mxu0 %v748_v27  ;;  %865 = vmatmul.f32.gmra.mxu1 %v749_v28  ;;  %v913_v27 = vld [vmem:[#allocation7 + $0x58] sm:$0xff]  ;;  %v902_v28 = vld [vmem:[#allocation7] sm:$0xff]  ;;  %s1634_s21 = sshll.u32 %s2618_s0, 3 }
 0x13f   : > { %824 = vmatmul.f32.gmra.mxu2 %v764_v15  ;;  %889 = vmatmul.f32.gmra.mxu3 %v765_v16  ;;  %s1482_s27 = scalar_lea.hbm %s2743_s3, %s1634_s21 }
 0x140   : > { %978 = vmatpush.msrb.mxu2 %v914_v17  ;;  %1043 = vmatpush.msrb.mxu3 %v915_v18  ;;  %s1485_s19 = sshll.u32 %s1482_s27, 4  ;;  %s1486_s19 = int_to_ptr.hbm [resolvable:$true] %s1485_s19 }
 0x141   : > { %1108 = vmatpush.msrb.mxu0 %v916_v20  ;;  %1173 = vmatpush.msrb.mxu1 %v917_v23  ;;  %v1226_v23 = vld [vmem:[%s2230_s20] sm:$0xf]  ;;  %s1622_s20 = sshll.u32 %s2227_s4, 6  ;;  %s1903_s24 = sshra.s32 %s1486_s19, 4  ;;  %s1904_s24 = int_to_ptr.hbm [resolvable:$true] %s1903_s24 }
 0x142   : > { %979 = vmatpush.msrb.mxu2 %v910_v21  ;;  %1044 = vmatpush.msrb.mxu3 %v911_v22  ;;  %s2626_s13 = scalar_lea.vmem [#allocation8], %s1622_s20  ;;  %s1905_s8 = scalar_lea.hbm %s1904_s24, 64 }
 0x143   : > { %1109 = vmatpush.msrb.mxu0 %v912_v24  ;;  %1174 = vmatpush.msrb.mxu1 %v913_v27  ;;  %s1483_s12 = sshll.u32 %s2626_s13, 4  ;;  %p1906_p1 = scmp.ne.s32.totalorder %s1904_s24, %s1905_s8  ;;  %s1484_s12 = int_to_ptr.vmem [resolvable:$true] %s1483_s12 }
 0x144   : > { %980 = vmatpush.msrb.mxu2 %v906_v25  ;;  %1045 = vmatpush.msrb.mxu3 %v907_v26  ;;  %v1227_v25 = vadd.f32 1.0, %v1226_v23  ;;  %s1909_s20 = scalar_lea.hbm %s2743_s3, 1024  ;;  %p1910_p11 = scmp.lt.s32.totalorder %s1904_s24, %s2743_s3 }
 0x145   : > { %1110 = vmatpush.msrb.mxu0 %v908_v36  ;;  %1175 = vmatpush.msrb.mxu1 %v909_v37  ;;  %p1907_p3 = pnand %p1906_p1, %p2187_p12  ;;  %p1911_p2 = scmp.lt.s32.totalorder %s1909_s20, %s1905_s8 }
 0x146   : > { %803 = vmatmul.f32.gmra.mxu0 %v750_v46  ;;  %868 = vmatmul.f32.gmra.mxu1 %v751_v47  ;;  %v2503_v26 = vmul.f32 3.5, %v1227_v25 }
 0x147   : > { %981 = vmatpush.msrb.mxu2 %v902_v28  ;;  %1046 = vmatpush.msrb.mxu3 %v903_v29  ;;  %p1908_p9 = pneg %p1907_p3  ;;  %p1912_p5 = por %p1911_p2, %p1910_p11 }
 0x148   : > { %827 = vmatmul.f32.gmra.mxu2 %v766_v30  ;;  %892 = vmatmul.f32.gmra.mxu3 %v767_v31  ;;  %v1624_v27 = vadd.f32 -1.0, %v2503_v26  ;;  %v1229_v30 = vand.u32 2147483647, %v2503_v26 }
 0x149   : > { %1111 = vmatpush.msrb.mxu0 %v904_v38  ;;  %1176 = vmatpush.msrb.mxu1 %v905_v40  ;;  %p1913_p6 = pnand %p1912_p5, %p1908_p9 }
 0x14a   : > { %v1258_v31 = vand.u32 2147483647, %v1624_v27 }
 0x14e   : > { %806 = vmatmul.f32.gmra.mxu0 %v752_v62  ;;  %871 = vmatmul.f32.gmra.mxu1 %v753_v63 }
 0x150   : > { %830 = vmatmul.f32.gmra.mxu2 %v768_v32  ;;  %895 = vmatmul.f32.gmra.mxu3 %v769_v33  ;;  %v1230_v32 = vsub.f32 1.0, %v1229_v30 }
 0x152   : > { %v1231_v38 = vmax.f32 %v1230_v32, 0.0 }
 0x156   : > { %809 = vmatmul.f32.gmra.mxu0 %v754_v13  ;;  %874 = vmatmul.f32.gmra.mxu1 %v755_v14 }
 0x158   : > { %833 = vmatmul.f32.gmra.mxu2 %v770_v34  ;;  %898 = vmatmul.f32.gmra.mxu3 %v771_v35  ;;  %v1259_v35 = vsub.f32 1.0, %v1258_v31 }
 0x15a   : > { %v1260_v40 = vmax.f32 %v1259_v35, 0.0 }
 0x19b   : > { %v789_v41 = vpop.f32.mrf.mxu0  ;;  %v854_v42 = vpop.f32.mrf.mxu1 }
 0x19c   : > { %v855_v43 = vadd.f32 %v854_v42, %v789_v41  ;;  %v1625_v41 = vadd.f32 -2.0, %v2503_v26  ;;  %v1235_v42 = vperm.slane %v1231_v38, 2 }
 0x19e   : > { %982 = vmatmul.f32.vlgmr.msrb.gmra.mxu2 %v855_v43  ;;  %1047 = vmatmul.f32.vlgmr.msrb.gmra.mxu3 %v855_v43 }
 0x19f   : > { %1112 = vmatmul.f32.vlgmr.msrb.gmra.mxu0 %v855_v43  ;;  %1177 = vmatmul.f32.vlgmr.msrb.gmra.mxu1 %v855_v43  ;;  %v1236_v43 = vperm.slane %v1231_v38, 3 }
 0x1a2   : > { %v813_v59 = vpop.f32.mrf.mxu2  ;;  %v878_v60 = vpop.f32.mrf.mxu3 }
 0x1a3   : > { %v792_v44 = vpop.f32.mrf.mxu0  ;;  %v857_v45 = vpop.f32.mrf.mxu1  ;;  %v879_v4 = vadd.f32 %v878_v60, %v813_v59 }
 0x1a4   : > { %v858_v46 = vadd.f32 %v857_v45, %v792_v44 }
 0x1a6   : > { %985 = vmatmul.f32.gmra.mxu2 %v858_v46  ;;  %1050 = vmatmul.f32.gmra.mxu3 %v858_v46 }
 0x1a7   : > { %1115 = vmatmul.f32.gmra.mxu0 %v858_v46  ;;  %1180 = vmatmul.f32.gmra.mxu1 %v858_v46  ;;  %v1264_v46 = vperm.slane %v1260_v40, 2 }
 0x1aa   : > { %v816_v0 = vpop.f32.mrf.mxu2  ;;  %v881_v1 = vpop.f32.mrf.mxu3 }
 0x1ab   : > { %v795_v47 = vpop.f32.mrf.mxu0  ;;  %v860_v48 = vpop.f32.mrf.mxu1  ;;  %v882_v7 = vadd.f32 %v881_v1, %v816_v0 }
 0x1ac   : > { %v861_v49 = vadd.f32 %v860_v48, %v795_v47  ;;  %v1265_v47 = vperm.slane %v1260_v40, 3 }
 0x1ae   : > { %988 = vmatmul.f32.gmra.mxu2 %v861_v49  ;;  %1053 = vmatmul.f32.gmra.mxu3 %v861_v49 }
 0x1af   : > { %1118 = vmatmul.f32.gmra.mxu0 %v861_v49  ;;  %1183 = vmatmul.f32.gmra.mxu1 %v861_v49 }
 0x1b2   : > { %v819_v5 = vpop.f32.mrf.mxu2  ;;  %v884_v6 = vpop.f32.mrf.mxu3 }
 0x1b3   : > { %v798_v50 = vpop.f32.mrf.mxu0  ;;  %v863_v51 = vpop.f32.mrf.mxu1  ;;  %v885_v10 = vadd.f32 %v884_v6, %v819_v5 }
 0x1b4   : > { %v864_v52 = vadd.f32 %v863_v51, %v798_v50  ;;  %v1287_v50 = vand.u32 2147483647, %v1625_v41 }
 0x1b6   : > { %991 = vmatmul.f32.gmra.mxu2 %v864_v52  ;;  %1056 = vmatmul.f32.gmra.mxu3 %v864_v52 }
 0x1b7   : > { %1121 = vmatmul.f32.gmra.mxu0 %v864_v52  ;;  %1186 = vmatmul.f32.gmra.mxu1 %v864_v52 }
 0x1ba   : > { %v822_v8 = vpop.f32.mrf.mxu2  ;;  %v887_v9 = vpop.f32.mrf.mxu3 }
 0x1bb   : > { %v801_v53 = vpop.f32.mrf.mxu0  ;;  %v866_v54 = vpop.f32.mrf.mxu1  ;;  %v888_v13 = vadd.f32 %v887_v9, %v822_v8 }
 0x1bc   : > { %v867_v55 = vadd.f32 %v866_v54, %v801_v53 }
 0x1be   : > { %994 = vmatmul.f32.gmra.mxu2 %v867_v55  ;;  %1059 = vmatmul.f32.gmra.mxu3 %v867_v55 }
 0x1bf   : > { %1124 = vmatmul.f32.gmra.mxu0 %v867_v55  ;;  %1189 = vmatmul.f32.gmra.mxu1 %v867_v55  ;;  %v1233_v55 = vperm.slane %v1231_v38, 0 }
 0x1c2   : > { %v825_v11 = vpop.f32.mrf.mxu2  ;;  %v890_v12 = vpop.f32.mrf.mxu3 }
 0x1c3   : > { %v804_v56 = vpop.f32.mrf.mxu0  ;;  %v869_v57 = vpop.f32.mrf.mxu1  ;;  %v891_v14 = vadd.f32 %v890_v12, %v825_v11 }
 0x1c4   : > { %v870_v58 = vadd.f32 %v869_v57, %v804_v56  ;;  %v1234_v56 = vperm.slane %v1231_v38, 1  ;;  %v1262_v57 = vperm.slane %v1260_v40, 0 }
 0x1c6   : > { %997 = vmatmul.f32.gmra.mxu2 %v870_v58  ;;  %1062 = vmatmul.f32.gmra.mxu3 %v870_v58 }
 0x1c7   : > { %1127 = vmatmul.f32.gmra.mxu0 %v870_v58  ;;  %1192 = vmatmul.f32.gmra.mxu1 %v870_v58  ;;  %v1263_v58 = vperm.slane %v1260_v40, 1 }
 0x1cb   : > { %v807_v61 = vpop.f32.mrf.mxu0  ;;  %v872_v62 = vpop.f32.mrf.mxu1 }
 0x1cc   : > { %v873_v63 = vadd.f32 %v872_v62, %v807_v61  ;;  %v828_v15 = vpop.f32.mrf.mxu2  ;;  %v893_v16 = vpop.f32.mrf.mxu3  ;;  %v1288_v61 = vsub.f32 1.0, %v1287_v50 }
 0x1cd   : > { %v894_v17 = vadd.f32 %v893_v16, %v828_v15 }
 0x1ce   : > { %1000 = vmatmul.f32.gmra.mxu2 %v873_v63  ;;  %1065 = vmatmul.f32.gmra.mxu3 %v873_v63 }
 0x1cf   : > { %1130 = vmatmul.f32.gmra.mxu0 %v873_v63  ;;  %1195 = vmatmul.f32.gmra.mxu1 %v873_v63 }
 0x1d3   : > { %v810_v2 = vpop.f32.mrf.mxu0  ;;  %v875_v39 = vpop.f32.mrf.mxu1 }
 0x1d4   : > { %v876_v3 = vadd.f32 %v875_v39, %v810_v2  ;;  %v831_v18 = vpop.f32.mrf.mxu2  ;;  %v896_v19 = vpop.f32.mrf.mxu3 }
 0x1d5   : > { %v897_v20 = vadd.f32 %v896_v19, %v831_v18 }
 0x1d6   : > { %1003 = vmatmul.f32.gmra.mxu2 %v876_v3  ;;  %1068 = vmatmul.f32.gmra.mxu3 %v876_v3 }
 0x1d7   : > { %1133 = vmatmul.f32.gmra.mxu0 %v876_v3  ;;  %1198 = vmatmul.f32.gmra.mxu1 %v876_v3 }
 0x1dc   : > { %v834_v21 = vpop.f32.mrf.mxu2  ;;  %v899_v22 = vpop.f32.mrf.mxu3 }
 0x1dd   : > { %v900_v24 = vadd.f32 %v899_v22, %v834_v21 }
 0x1de   : > { %1006 = vmatmul.f32.gmra.mxu2 %v879_v4  ;;  %1071 = vmatmul.f32.gmra.mxu3 %v879_v4 }
 0x1df   : > { %1136 = vmatmul.f32.gmra.mxu0 %v879_v4  ;;  %1201 = vmatmul.f32.gmra.mxu1 %v879_v4 }
 0x1e6   : > { %1009 = vmatmul.f32.gmra.mxu2 %v882_v7  ;;  %1074 = vmatmul.f32.gmra.mxu3 %v882_v7 }
 0x1e7   : > { %1139 = vmatmul.f32.gmra.mxu0 %v882_v7  ;;  %1204 = vmatmul.f32.gmra.mxu1 %v882_v7  ;;  %v1289_v7 = vmax.f32 %v1288_v61, 0.0 }
 0x1e9   : > { %v1293_v16 = vperm.slane %v1289_v7, 2  ;;  %v1292_v30 = vperm.slane %v1289_v7, 1 }
 0x1ee   : > { %1012 = vmatmul.f32.gmra.mxu2 %v885_v10  ;;  %1077 = vmatmul.f32.gmra.mxu3 %v885_v10 }
 0x1ef   : > { %1142 = vmatmul.f32.gmra.mxu0 %v885_v10  ;;  %1207 = vmatmul.f32.gmra.mxu1 %v885_v10 }
 0x1f6   : > { %1015 = vmatmul.f32.gmra.mxu2 %v888_v13  ;;  %1080 = vmatmul.f32.gmra.mxu3 %v888_v13 }
 0x1f7   : > { %1145 = vmatmul.f32.gmra.mxu0 %v888_v13  ;;  %1210 = vmatmul.f32.gmra.mxu1 %v888_v13 }
 0x1fe   : > { %1018 = vmatmul.f32.gmra.mxu2 %v891_v14  ;;  %1083 = vmatmul.f32.gmra.mxu3 %v891_v14 }
 0x1ff   : > { %1148 = vmatmul.f32.gmra.mxu0 %v891_v14  ;;  %1213 = vmatmul.f32.gmra.mxu1 %v891_v14 }
 0x206   : > { %1021 = vmatmul.f32.gmra.mxu2 %v894_v17  ;;  %1086 = vmatmul.f32.gmra.mxu3 %v894_v17 }
 0x207   : > { %1151 = vmatmul.f32.gmra.mxu0 %v894_v17  ;;  %1216 = vmatmul.f32.gmra.mxu1 %v894_v17  ;;  %v1294_v17 = vperm.slane %v1289_v7, 3 }
 0x20e   : > { %1024 = vmatmul.f32.gmra.mxu2 %v897_v20  ;;  %1089 = vmatmul.f32.gmra.mxu3 %v897_v20 }
 0x20f   : > { %1154 = vmatmul.f32.gmra.mxu0 %v897_v20  ;;  %1219 = vmatmul.f32.gmra.mxu1 %v897_v20 }
 0x216   : > { %1027 = vmatmul.f32.gmra.mxu2 %v900_v24  ;;  %1092 = vmatmul.f32.gmra.mxu3 %v900_v24 }
 0x217   : > { %1157 = vmatmul.f32.gmra.mxu0 %v900_v24  ;;  %1222 = vmatmul.f32.gmra.mxu1 %v900_v24 }
 0x21c   : > { %v1113_v28 = vpop.f32.mrf.mxu0  ;;  %v1178_v29 = vpop.f32.mrf.mxu1 }
 0x21d   : > { %v1243_v51 = vmul.f32 %v1235_v42, %v1113_v28  ;;  %v1244_v52 = vmul.f32 %v1236_v43, %v1178_v29  ;;  %v1291_v29 = vperm.slane %v1289_v7, 0  ;;  %v1627_v7 = vadd.f32 -4.0, %v2503_v26 }
 0x221   : > { %v983_v33 = vpop.f32.mrf.mxu2  ;;  %v1048_v34 = vpop.f32.mrf.mxu3 }
 0x222   : > { %v1241_v0 = vmul.f32 %v1233_v55, %v983_v33  ;;  %v1242_v1 = vmul.f32 %v1234_v56, %v1048_v34 }
 0x224   : > { %v1116_v36 = vpop.f32.mrf.mxu0  ;;  %v1181_v37 = vpop.f32.mrf.mxu1 }
 0x225   : > { %v1247_v8 = vmul.f32 %v1235_v42, %v1116_v36  ;;  %v1248_v9 = vmul.f32 %v1236_v43, %v1181_v37 }
 0x229   : > { %v986_v44 = vpop.f32.mrf.mxu2  ;;  %v1051_v45 = vpop.f32.mrf.mxu3 }
 0x22a   : > { %v1245_v18 = vmul.f32 %v1233_v55, %v986_v44  ;;  %v1246_v19 = vmul.f32 %v1234_v56, %v1051_v45 }
 0x22c   : > { %v1119_v48 = vpop.f32.mrf.mxu0  ;;  %v1184_v49 = vpop.f32.mrf.mxu1 }
 0x22d   : > { %v1272_v53 = vmul.f32 %v1264_v46, %v1119_v48  ;;  %v1273_v54 = vmul.f32 %v1265_v47, %v1184_v49 }
 0x22f   : > { %v1280_v59 = vadd.f32 %v1272_v53, %v1243_v51  ;;  %v1281_v60 = vadd.f32 %v1273_v54, %v1244_v52 }
 0x231   : > { %v989_v62 = vpop.f32.mrf.mxu2  ;;  %v1054_v63 = vpop.f32.mrf.mxu3 }
 0x232   : > { %v1270_v2 = vmul.f32 %v1262_v57, %v989_v62  ;;  %v1271_v39 = vmul.f32 %v1263_v58, %v1054_v63 }
 0x234   : > { %v1278_v3 = vadd.f32 %v1270_v2, %v1241_v0  ;;  %v1279_v4 = vadd.f32 %v1271_v39, %v1242_v1  ;;  %v1122_v5 = vpop.f32.mrf.mxu0  ;;  %v1187_v6 = vpop.f32.mrf.mxu1 }
 0x235   : > { %v1276_v10 = vmul.f32 %v1264_v46, %v1122_v5  ;;  %v1277_v11 = vmul.f32 %v1265_v47, %v1187_v6 }
 0x237   : > { %v1284_v12 = vadd.f32 %v1276_v10, %v1247_v8  ;;  %v1285_v13 = vadd.f32 %v1277_v11, %v1248_v9  ;;  %v1628_v11 = vadd.f32 -5.0, %v2503_v26 }
 0x239   : > { %v992_v14 = vpop.f32.mrf.mxu2  ;;  %v1057_v15 = vpop.f32.mrf.mxu3 }
 0x23a   : > { %v1274_v20 = vmul.f32 %v1262_v57, %v992_v14  ;;  %v1275_v21 = vmul.f32 %v1263_v58, %v1057_v15  ;;  %v1629_v15 = vadd.f32 -6.0, %v2503_v26 }
 0x23c   : > { %v1282_v22 = vadd.f32 %v1274_v20, %v1245_v18  ;;  %v1283_v23 = vadd.f32 %v1275_v21, %v1246_v19  ;;  %v1125_v24 = vpop.f32.mrf.mxu0  ;;  %v1190_v25 = vpop.f32.mrf.mxu1  ;;  %v1403_v21 = vand.u32 2147483647, %v1629_v15 }
 0x23d   : > { %v1301_v27 = vmul.f32 %v1293_v16, %v1125_v24  ;;  %v1302_v28 = vmul.f32 %v1294_v17, %v1190_v25 }
 0x23f   : > { %v2508_v31 = vadd.f32 %v1301_v27, %v1280_v59  ;;  %v2510_v32 = vadd.f32 %v1302_v28, %v1281_v60 }
 0x241   : > { %v995_v33 = vpop.f32.mrf.mxu2  ;;  %v1060_v34 = vpop.f32.mrf.mxu3 }
 0x242   : > { %v1299_v35 = vmul.f32 %v1291_v29, %v995_v33  ;;  %v1300_v36 = vmul.f32 %v1292_v30, %v1060_v34 }
 0x244   : > { %v2512_v37 = vadd.f32 %v1299_v35, %v1278_v3  ;;  %v2514_v38 = vadd.f32 %v1300_v36, %v1279_v4  ;;  %v1128_v40 = vpop.f32.mrf.mxu0  ;;  %v1193_v41 = vpop.f32.mrf.mxu1  ;;  %v1626_v3 = vadd.f32 -3.0, %v2503_v26 }
 0x245   : > { %v1305_v42 = vmul.f32 %v1293_v16, %v1128_v40  ;;  %v1306_v43 = vmul.f32 %v1294_v17, %v1193_v41  ;;  %v1374_v17 = vand.u32 2147483647, %v1628_v11 }
 0x246   : > { %v1316_v6 = vand.u32 2147483647, %v1626_v3 }
 0x247   : > { %v2516_v44 = vadd.f32 %v1305_v42, %v1284_v12  ;;  %v2518_v45 = vadd.f32 %v1306_v43, %v1285_v13  ;;  %v1345_v12 = vand.u32 2147483647, %v1627_v7  ;;  %v1375_v24 = vsub.f32 1.0, %v1374_v17 }
 0x248   : > { %v1317_v10 = vsub.f32 1.0, %v1316_v6 }
 0x249   : > { %v998_v46 = vpop.f32.mrf.mxu2  ;;  %v1063_v47 = vpop.f32.mrf.mxu3  ;;  %v1346_v18 = vsub.f32 1.0, %v1345_v12  ;;  %v2565_v40 = vmax.f32 %v1375_v24, 0.0 }
 0x24a   : > { %v1303_v48 = vmul.f32 %v1291_v29, %v998_v46  ;;  %v1304_v49 = vmul.f32 %v1292_v30, %v1063_v47  ;;  %v2552_v16 = vmax.f32 %v1317_v10, 0.0  ;;  %v1404_v30 = vsub.f32 1.0, %v1403_v21 }
 0x24b   : > { %v2560_v25 = vmax.f32 %v1346_v18, 0.0  ;;  %v1380_v10 = vperm.slane %v2565_v40, 2  ;;  %v1381_v11 = vperm.slane %v2565_v40, 3 }
 0x24c   : > { %v2520_v50 = vadd.f32 %v1303_v48, %v1282_v22  ;;  %v2522_v51 = vadd.f32 %v1304_v49, %v1283_v23  ;;  %v1131_v52 = vpop.f32.mrf.mxu0  ;;  %v1196_v53 = vpop.f32.mrf.mxu1  ;;  %v1630_v22 = vadd.f32 -7.0, %v2503_v26  ;;  %v1322_v23 = vperm.slane %v2552_v16, 2 }
 0x24d   : > { %v1323_v29 = vperm.slane %v2552_v16, 3  ;;  %v1320_v34 = vperm.slane %v2552_v16, 0  ;;  %v1321_v35 = vperm.slane %v2552_v16, 1  ;;  %v1351_v26 = vperm.slane %v2560_v25, 2 }
 0x24e   : > { %v1432_v33 = vand.u32 2147483647, %v1630_v22  ;;  %v1330_v36 = vmul.f32 %v1322_v23, %v1131_v52  ;;  %v1352_v41 = vperm.slane %v2560_v25, 3  ;;  %v2569_v43 = vmax.f32 %v1404_v30, 0.0 }
 0x24f   : > { %v1331_v42 = vmul.f32 %v1323_v29, %v1196_v53  ;;  %v1349_v6 = vperm.slane %v2560_v25, 0  ;;  %v1350_v52 = vperm.slane %v2560_v25, 1  ;;  %v1378_v30 = vperm.slane %v2565_v40, 0 }
 0x250   : > { %v1433_v48 = vsub.f32 1.0, %v1432_v33  ;;  %v1338_v7 = vadd.f32 %v1330_v36, %v2508_v31 }
 0x251   : > { %v1001_v54 = vpop.f32.mrf.mxu2  ;;  %v1066_v55 = vpop.f32.mrf.mxu3  ;;  %v1339_v21 = vadd.f32 %v1331_v42, %v2510_v32 }
 0x252   : > { %v1328_v49 = vmul.f32 %v1320_v34, %v1001_v54  ;;  %v1329_v3 = vmul.f32 %v1321_v35, %v1066_v55  ;;  %v1409_v54 = vperm.slane %v2569_v43, 2  ;;  %v1410_v55 = vperm.slane %v2569_v43, 3 }
 0x253   : > { %v2579_v22 = vmax.f32 %v1433_v48, 0.0 }
 0x254   : > { %v1134_v56 = vpop.f32.mrf.mxu0  ;;  %v1199_v57 = vpop.f32.mrf.mxu1  ;;  %v1336_v31 = vadd.f32 %v1328_v49, %v2512_v37  ;;  %v1337_v24 = vadd.f32 %v1329_v3, %v2514_v38 }
 0x255   : > { %v1334_v12 = vmul.f32 %v1322_v23, %v1134_v56  ;;  %v1335_v15 = vmul.f32 %v1323_v29, %v1199_v57  ;;  %v1379_v56 = vperm.slane %v2565_v40, 1  ;;  %v1439_v49 = vperm.slane %v2579_v22, 3 }
 0x257   : > { %v1342_v23 = vadd.f32 %v1334_v12, %v2516_v44  ;;  %v1343_v37 = vadd.f32 %v1335_v15, %v2518_v45  ;;  %v1407_v44 = vperm.slane %v2569_v43, 0  ;;  %v1408_v45 = vperm.slane %v2569_v43, 1 }
 0x259   : > { %v2524_v58 = vpop.f32.mrf.mxu2  ;;  %v2526_v59 = vpop.f32.mrf.mxu3 }
 0x25c   : > { %v1137_v60 = vpop.f32.mrf.mxu0  ;;  %v1202_v61 = vpop.f32.mrf.mxu1 }
 0x25d   : > { %v1359_v53 = vmul.f32 %v1351_v26, %v1137_v60  ;;  %v1360_v16 = vmul.f32 %v1352_v41, %v1202_v61 }
 0x25f   : > { %v1367_v29 = vadd.f32 %v1359_v53, %v1338_v7  ;;  %v1368_v38 = vadd.f32 %v1360_v16, %v1339_v21 }
 0x261   : > { %v2528_v62 = vpop.f32.mrf.mxu2  ;;  %v2530_v63 = vpop.f32.mrf.mxu3 }
 0x262   : > { %v1357_v57 = vmul.f32 %v1349_v6, %v2528_v62  ;;  %v1358_v32 = vmul.f32 %v1350_v52, %v2530_v63  ;;  %v1438_v62 = vperm.slane %v2579_v22, 2  ;;  %v1332_v63 = vmul.f32 %v1320_v34, %v2524_v58 }
 0x264   : > { %v2532_v0 = vpop.f32.mrf.mxu0  ;;  %v2534_v1 = vpop.f32.mrf.mxu1 }
 0x265   : > { %v1363_v7 = vmul.f32 %v1351_v26, %v2532_v0  ;;  %v1364_v12 = vmul.f32 %v1352_v41, %v2534_v1  ;;  %v1436_v1 = vperm.slane %v2579_v22, 0  ;;  %v1437_v26 = vperm.slane %v2579_v22, 1 }
 0x269   : > { %v2536_v2 = vpop.f32.mrf.mxu2  ;;  %v2538_v39 = vpop.f32.mrf.mxu3 }
 0x26c   : > { %v1143_v4 = vpop.f32.mrf.mxu0  ;;  %v1208_v5 = vpop.f32.mrf.mxu1 }
 0x26d   : > { %v1388_v60 = vmul.f32 %v1380_v10, %v1143_v4  ;;  %v1389_v61 = vmul.f32 %v1381_v11, %v1208_v5  ;;  %v1333_v4 = vmul.f32 %v1321_v35, %v2526_v59  ;;  %v1365_v5 = vadd.f32 %v1357_v57, %v1336_v31 }
 0x26e   : > { %v1372_v57 = vadd.f32 %v1364_v12, %v1343_v37 }
 0x26f   : > { %v1397_v3 = vadd.f32 %v1389_v61, %v1368_v38  ;;  %v1341_v25 = vadd.f32 %v1333_v4, %v2522_v51 }
 0x271   : > { %v2542_v8 = vpop.f32.mrf.mxu2  ;;  %v2544_v9 = vpop.f32.mrf.mxu3 }
 0x272   : > { %v1386_v58 = vmul.f32 %v1378_v30, %v2542_v8  ;;  %v1387_v59 = vmul.f32 %v1379_v56, %v2544_v9 }
 0x274   : > { %v2547_v13 = vpop.f32.mrf.mxu0  ;;  %v2549_v14 = vpop.f32.mrf.mxu1 }
 0x275   : > { %v1392_v8 = vmul.f32 %v1380_v10, %v2547_v13  ;;  %v1393_v41 = vmul.f32 %v1381_v11, %v2549_v14 }
 0x279   : > { %v2554_v19 = vpop.f32.mrf.mxu2  ;;  %v2556_v20 = vpop.f32.mrf.mxu3 }
 0x27c   : > { %v1149_v27 = vpop.f32.mrf.mxu0  ;;  %v1214_v28 = vpop.f32.mrf.mxu1 }
 0x27d   : > { %v1417_v33 = vmul.f32 %v1409_v54, %v1149_v27  ;;  %v1418_v36 = vmul.f32 %v1410_v55, %v1214_v28  ;;  %v1366_v27 = vadd.f32 %v1358_v32, %v1337_v24  ;;  %v1396_v28 = vadd.f32 %v1388_v60, %v1367_v29 }
 0x27e   : > { %v1371_v24 = vadd.f32 %v1363_v7, %v1342_v23  ;;  %v1394_v32 = vadd.f32 %v1386_v58, %v1365_v5 }
 0x27f   : > { %v1425_v43 = vadd.f32 %v1417_v33, %v1396_v28  ;;  %v1426_v15 = vadd.f32 %v1418_v36, %v1397_v3  ;;  %v1395_v60 = vadd.f32 %v1387_v59, %v1366_v27 }
 0x281   : > { %v1019_v46 = vpop.f32.mrf.mxu2  ;;  %v1084_v47 = vpop.f32.mrf.mxu3 }
 0x282   : > { %v1415_v21 = vmul.f32 %v1407_v44, %v1019_v46  ;;  %v1416_v0 = vmul.f32 %v1408_v45, %v1084_v47  ;;  %v1361_v46 = vmul.f32 %v1349_v6, %v2536_v2  ;;  %v1362_v47 = vmul.f32 %v1350_v52, %v2538_v39 }
 0x283   : > { %v1340_v2 = vadd.f32 %v1332_v63, %v2520_v50  ;;  %v1400_v39 = vadd.f32 %v1392_v8, %v1371_v24  ;;  %v1401_v6 = vadd.f32 %v1393_v41, %v1372_v57  ;;  %v1390_v52 = vmul.f32 %v1378_v30, %v2554_v19 }
 0x284   : > { %v1152_v17 = vpop.f32.mrf.mxu0  ;;  %v1217_v18 = vpop.f32.mrf.mxu1  ;;  %v1423_v22 = vadd.f32 %v1415_v21, %v1394_v32  ;;  %v1424_v61 = vadd.f32 %v1416_v0, %v1395_v60  ;;  %v1370_v63 = vadd.f32 %v1362_v47, %v1341_v25 }
 0x285   : > { %v1421_v13 = vmul.f32 %v1409_v54, %v1152_v17  ;;  %v1422_v10 = vmul.f32 %v1410_v55, %v1217_v18  ;;  %v1391_v17 = vmul.f32 %v1379_v56, %v2556_v20  ;;  %v1369_v36 = vadd.f32 %v1361_v46, %v1340_v2 }
 0x287   : > { %v1429_v50 = vadd.f32 %v1421_v13, %v1400_v39  ;;  %v1430_v51 = vadd.f32 %v1422_v10, %v1401_v6  ;;  %v1398_v30 = vadd.f32 %v1390_v52, %v1369_v36  ;;  %v1399_v56 = vadd.f32 %v1391_v17, %v1370_v63 }
 0x289   : > { %v2593_v42 = vpop.f32.mrf.mxu2  ;;  %v2595_v48 = vpop.f32.mrf.mxu3 }
 0x28a   : > { %v1419_v4 = vmul.f32 %v1407_v44, %v2593_v42  ;;  %v1420_v19 = vmul.f32 %v1408_v45, %v2595_v48 }
 0x28c   : > { %v1155_v34 = vpop.f32.mrf.mxu0  ;;  %v1220_v35 = vpop.f32.mrf.mxu1  ;;  %v1428_v48 = vadd.f32 %v1420_v19, %v1399_v56 }
 0x28d   : > { %v1446_v53 = vmul.f32 %v1438_v62, %v1155_v34  ;;  %v1447_v16 = vmul.f32 %v1439_v49, %v1220_v35 }
 0x28f   : > { %v1454_v31 = vadd.f32 %v1446_v53, %v1425_v43  ;;  %v1455_v9 = vadd.f32 %v1447_v16, %v1426_v15 }
 0x291   : > { %1462 = vst [vmem:[%s2626_s13 + $0x10] sm:$0xff] %v1454_v31  ;;  %v1025_v14 = vpop.f32.mrf.mxu2  ;;  %v1090_v11 = vpop.f32.mrf.mxu3 }
 0x292   : > { %1463 = vst [vmem:[%s2626_s13 + $0x18] sm:$0xff] %v1455_v9  ;;  %v1444_v23 = vmul.f32 %v1436_v1, %v1025_v14  ;;  %v1445_v37 = vmul.f32 %v1437_v26, %v1090_v11 }
 0x294   : > { %v1452_v18 = vadd.f32 %v1444_v23, %v1423_v22  ;;  %v1453_v54 = vadd.f32 %v1445_v37, %v1424_v61  ;;  %v1158_v55 = vpop.f32.mrf.mxu0  ;;  %v1223_v29 = vpop.f32.mrf.mxu1 }
 0x295   : > { %v1450_v38 = vmul.f32 %v1438_v62, %v1158_v55  ;;  %v1451_v33 = vmul.f32 %v1439_v49, %v1223_v29  ;;  %v1427_v49 = vadd.f32 %v1419_v4, %v1398_v30 }
 0x296   : > { %1460 = vst [vmem:[%s2626_s13] sm:$0xff] %v1452_v18 }
 0x297   : > { %1461 = vst [vmem:[%s2626_s13 + $0x8] sm:$0xff] %v1453_v54  ;;  %v1458_v20 = vadd.f32 %v1450_v38, %v1429_v50  ;;  %v1459_v40 = vadd.f32 %v1451_v33, %v1430_v51 }
 0x299   : > { %1466 = vst [vmem:[%s2626_s13 + $0x30] sm:$0xff] %v1458_v20  ;;  %v1028_v62 = vpop.f32.mrf.mxu2  ;;  %v1093_v42 = vpop.f32.mrf.mxu3 }
 0x29a   : > { %1467 = vst [vmem:[%s2626_s13 + $0x38] sm:$0xff] %v1459_v40  ;;  %v1448_v44 = vmul.f32 %v1436_v1, %v1028_v62  ;;  %v1449_v45 = vmul.f32 %v1437_v26, %v1093_v42 }
 0x29c   : > { %v1456_v5 = vadd.f32 %v1448_v44, %v1427_v49  ;;  %v1457_v27 = vadd.f32 %v1449_v45, %v1428_v48 }
 0x29e   : > { %1464 = vst [vmem:[%s2626_s13 + $0x20] sm:$0xff] %v1456_v5 }
 0x29f   : > { %1465 = vst [vmem:[%s2626_s13 + $0x28] sm:$0xff] %v1457_v27 }
 0x2a0   : > { %1916 = shalt.err (!%p1913_p6)
}
 0x2a1   : > { %s2027_s4 = smov 512   ;;  %s2028_s0 = smov 4096  }
 0x2a2   : > { %s2029_s13 = smov 32  }
 0x2a3   : > { %1678 = dma.vmem_to_hbm [thread:$0]  (%p2187_p12), %s1484_s12, 1024, %s1486_s19, %s1469_s15, %s2027_s4, %s2028_s0, %s2029_s13  }
 0x2a4 PF: > { %s2745_s21 = sld [smem:[#allocation13_spill]]  ;;  %p1698_p8 = scmp.ge.s32.totalorder %s2019_s7, 2 }
 0x2a6   : > { %p1692_p10 = pnand %p1698_p8, %p2193_p7 }
 0x2a8   : > { %p1693_p13 = pneg %p1692_p10 }
 0x2aa   : > { %s1500_s2 = sand.u32 1, %s2745_s21  }
 0x2ab   : > { %s1501_s27 = scalar_lea.sflag [#allocation4], %s1500_s2 }
 0x2ac   : > { %1974 = dma.done.wait (%p1693_p13), %s1501_s27, 1024  }
 0x2ad   : > { %1976 = vsyncadd (%p1693_p13), %s1501_s27, 4294966272  ;;  %s25_s7 = sadd.s32 1, %s2019_s7   ;;  %s2747_s12 = sld [smem:[#allocation16_spill]] }
 0x2ae   : > { %p22_p4 = scmp.ge.s32.totalorder %s25_s7, 18   ;;  %s2748_s19 = sld [smem:[#allocation17_spill]] }
 0x2af   : > { %s2749_s21 = smov %s1983_s22  ;;  %s2750_s22 = smov %s1987_s23 }
 0x2b0   : > { %s2751_s23 = smov %s2204_s11  ;;  %s2752_s24 = smov %s1995_s25 }
 0x2b1   : > { %s2753_s25 = smov %s1999_s26  ;;  %s2754_s26 = smov %s2201_s5 }
 0x2b2   : > { %s2755_s27 = smov %s2011_s29  ;;  %s2756_s28 = smov %s2015_s30 }
 0x2b3   : > { %s2757_s29 = smov %s2747_s12  ;;  %24 = sbr.rel (!%p22_p4) target bundleno = 18 (0x12), region = 106 }
 0x2b4   : > { %s2758_s30 = smov %s2748_s19 }
 0x2b8   :  { %1507 = vsyncpa [#allocation3], 1 }
 0x2b9   :  { %1509 = vsyncpa [#allocation3 + $0x1], 1 }
 0x2ba   :  { %1510 = vsyncpa [#allocation6], 1 }
 0x2bb   :  { %1512 = vsyncpa [#allocation6 + $0x1], 1 }
 0x2bc   :  { %1513 = vsyncpa [#allocation4], 1 }
 0x2bd   :  { %1515 = vsyncpa [#allocation4 + $0x1], 1 }

</bundles_post_ra>
